<compile_context>
chip_gen: v7x
topology: tpu7x:2x2x1
jax: 0.10.0
libtpu: 0.0.40
codegen_flags: <defaults>
</compile_context>

<pallas_src>
import functools

import jax
import jax.numpy as jnp
from jax import lax
from jax.experimental import pallas as pl
from jax.experimental.pallas import tpu as pltpu

EPS = 1e-5                              # nn.LayerNorm default eps
VMEM_LIMIT_BYTES = 48 * 1024 * 1024     # headroom on v7x (64 MiB physical)
STORE_DTYPE = jnp.bfloat16              # inter-layer activation storage dtype


# ----------------------------------------------------------------------------
# Shared helpers (used by kernels and the pure-JAX reference).
# ----------------------------------------------------------------------------
def _round_up(n, m):
    return ((n + m - 1) // m) * m


def _ceil_div(a, b):
    return -(-a // b)


def _choose_tile(t, target):
    """t is a multiple of 8.  Whole axis in one tile when it fits, otherwise the
    largest multiple-of-8 divisor of t that is <= target."""
    if t <= max(8, target):
        return t
    d = min((target // 8) * 8, t)
    while d >= 8:
        if t % d == 0:
            return d
        d -= 8
    return t


def _activate(h, kind):
    if kind == "relu":
        return jnp.maximum(h, 0.0)
    if kind == "silu":
        return h * jax.nn.sigmoid(h)
    if kind == "gelu":
        return jax.nn.gelu(h, approximate=False)
    if kind == "mish":
        return h * jnp.tanh(jax.nn.softplus(h))
    raise ValueError(f"unknown activation {kind}")


def _norm(h, gamma, beta, norm_type):
    # Normalization over the channel (last) axis, in f32, two-pass (PyTorch-like).
    if norm_type == "layernorm":
        mu = jnp.mean(h, axis=-1, keepdims=True)
        d = h - mu
        var = jnp.mean(d * d, axis=-1, keepdims=True)
        return d * lax.rsqrt(var + EPS) * gamma + beta
    if norm_type == "rmsnorm":
        # TODO(synk): RMSNorm class not given in the spec; assuming
        # gamma * x * rsqrt(mean(x^2) + eps) (beta unused).
        ms = jnp.mean(h * h, axis=-1, keepdims=True)
        return h * lax.rsqrt(ms + EPS) * gamma
    raise ValueError(f"unknown norm {norm_type}")


# ----------------------------------------------------------------------------
# In-kernel row shifts: XLU roll + single-row masked overwrite (no sublane
# concatenates of full tiles).  Row counts are always multiples of 8.
# ----------------------------------------------------------------------------
def _shift_down(a, top_row):
    """out[0] = top_row, out[i] = a[i-1]."""
    r = pltpu.roll(a, shift=1, axis=0)
    idx = lax.broadcasted_iota(jnp.int32, (a.shape[0], 1), 0)
    return jnp.where(idx == 0, top_row, r)


def _shift_up(a, bottom_row):
    """out[i] = a[i+1], out[-1] = bottom_row."""
    n = a.shape[0]
    r = pltpu.roll(a, shift=n - 1, axis=0)
    idx = lax.broadcasted_iota(jnp.int32, (n, 1), 0)
    return jnp.where(idx == n - 1, bottom_row, r)


def _strided_conv(xp, a_top, w0, w12, b, activation, cdt):
    """Conv1d(k=3, s=2, p=1) + activation on pair-packed rows.

    xp:    (R, 2C) with row t = [x[2t] | x[2t+1]]  (bf16 storage)
    a_top: (1, D)  f32, contribution of x[2*t0 - 1] through w0 (zeros at start)
    w0:    (C, D)  tap for x[2t-1];  w12: (2C, D) taps for x[2t], x[2t+1]
    """
    c = xp.shape[-1] // 2
    x_odd = xp[:, c:]                                      # lane slice, x[2t+1]
    a = jnp.dot(x_odd.astype(cdt), w0, preferred_element_type=jnp.float32)
    a = _shift_down(a, a_top)                              # a[t] = W0 @ x[2t-1]
    h = a + jnp.dot(xp.astype(cdt), w12, preferred_element_type=jnp.float32) + b
    return _activate(h, activation)


def _res_tail(h, h_before, h_after, w1a, w1b, w1c, b1, g1, be1,
              w2, b2, g2, be2, activation, norm_type, cdt):
    """ResConv1DBlock on the conv+act output h (f32, rows masked past valid)."""
    hp = _shift_down(h, h_before)                          # h[t-1]
    hn = _shift_up(h, h_after)                             # h[t+1]
    u = (jnp.dot(hp.astype(cdt), w1a, preferred_element_type=jnp.float32)
         + jnp.dot(h.astype(cdt), w1b, preferred_element_type=jnp.float32)
         + jnp.dot(hn.astype(cdt), w1c, preferred_element_type=jnp.float32) + b1)
    u = _activate(_norm(u, g1, be1, norm_type), activation)
    y = jnp.dot(u.astype(cdt), w2, preferred_element_type=jnp.float32) + b2
    y = _activate(_norm(y, g2, be2, norm_type), activation)
    return y + h


# ----------------------------------------------------------------------------
# Kernel 0: first strided Conv1d + activation (single time tile per batch).
# ----------------------------------------------------------------------------
def _conv0_kernel(xp_ref, w0_ref, w12_ref, b_ref, o_ref, *,
                  activation, valid_out, cdt):
    xp = xp_ref[0]                                         # (To, 2C0)
    d = w0_ref.shape[-1]
    zrow = jnp.zeros((1, d), jnp.float32)
    h = _strided_conv(xp, zrow, w0_ref[...], w12_ref[...], b_ref[...],
                      activation, cdt)
    rows = lax.broadcasted_iota(jnp.int32, (h.shape[0], 1), 0)
    o_ref[0] = jnp.where(rows < valid_out, h, 0.0).astype(o_ref.dtype)


# ----------------------------------------------------------------------------
# Kernel 1: fused layer = strided conv + act + full ResConv1DBlock.
# Single-tile variant (whole time axis per grid step).
# ----------------------------------------------------------------------------
def _fused_single_kernel(xp_ref, cw0_ref, cw12_ref, cb_ref,
                         w1a_ref, w1b_ref, w1c_ref, b1_ref, g1_ref, be1_ref,
                         w2_ref, b2_ref, g2_ref, be2_ref, o_ref, *,
                         activation, norm_type, valid_out, cdt):
    xp = xp_ref[0]                                         # (To, 2C)
    d = cw0_ref.shape[-1]
    zrow = jnp.zeros((1, d), jnp.float32)
    h = _strided_conv(xp, zrow, cw0_ref[...], cw12_ref[...], cb_ref[...],
                      activation, cdt)
    rows = lax.broadcasted_iota(jnp.int32, (h.shape[0], 1), 0)
    h = jnp.where(rows < valid_out, h, 0.0)                # zero padded rows
    out = _res_tail(h, zrow, zrow,
                    w1a_ref[...], w1b_ref[...], w1c_ref[...],
                    b1_ref[...], g1_ref[...], be1_ref[...],
                    w2_ref[...], b2_ref[...], g2_ref[...], be2_ref[...],
                    activation, norm_type, cdt)
    o_ref[0] = jnp.where(rows < valid_out, out, 0.0).astype(o_ref.dtype)


# ----------------------------------------------------------------------------
# Kernel 1 (tiled variant): time axis split into multiple-of-8 tiles.  Halo
# pairs come through extra 8-row blocks with clamped index maps; the two
# boundary conv rows (h[t0-1], h[t0+tt]) are recomputed in-kernel.
# ----------------------------------------------------------------------------
def _fused_tiled_kernel(xp_ref, hp_ref, hn_ref, cw0_ref, cw12_ref, cb_ref,
                        w1a_ref, w1b_ref, w1c_ref, b1_ref, g1_ref, be1_ref,
                        w2_ref, b2_ref, g2_ref, be2_ref, o_ref, *,
                        activation, norm_type, valid_out, tt, cdt):
    ti = pl.program_id(0)
    first = ti == 0
    last = ti == pl.num_programs(0) - 1
    t0 = ti * tt

    xp = xp_ref[0]                                         # (tt, 2C)
    c = xp.shape[-1] // 2
    hpf = hp_ref[0].astype(jnp.float32)                    # prev 8-row halo (ends at t0-1)
    hnf = hn_ref[0].astype(jnp.float32)                    # next 8-row halo (starts at t0+tt)

    # x[2*t0 - 1] (odd half of pair t0-1); Conv1d zero-pad at sequence start.
    prev1_odd = jnp.where(first, 0.0, hpf[7:8, c:])
    a_top = jnp.dot(prev1_odd.astype(cdt), cw0_ref[...],
                    preferred_element_type=jnp.float32)
    h = _strided_conv(xp, a_top, cw0_ref[...], cw12_ref[...], cb_ref[...],
                      activation, cdt)
    rows = t0 + lax.broadcasted_iota(jnp.int32, (tt, 1), 0)
    h = jnp.where(rows < valid_out, h, 0.0)

    # Boundary conv rows h[t0-1], h[t0+tt], needed as k=3 taps by the res conv.
    x_last_odd = xp[tt - 1:tt, c:].astype(jnp.float32)     # x[2*(t0+tt) - 1]
    bm1 = jnp.concatenate([hpf[6:7, c:], x_last_odd], axis=0)          # (2, C)
    next_pair = jnp.where(last, 0.0, hnf[0:1, :])
    bxp = jnp.concatenate([hpf[7:8, :], next_pair], axis=0)            # (2, 2C)
    hb = _activate(
        jnp.dot(bm1.astype(cdt), cw0_ref[...], preferred_element_type=jnp.float32)
        + jnp.dot(bxp.astype(cdt), cw12_ref[...], preferred_element_type=jnp.float32)
        + cb_ref[...], activation)                                     # (2, D)
    h_before = jnp.where(jnp.logical_and(ti > 0, t0 - 1 < valid_out),
                         hb[0:1, :], 0.0)
    h_after = jnp.where(t0 + tt < valid_out, hb[1:2, :], 0.0)

    out = _res_tail(h, h_before, h_after,
                    w1a_ref[...], w1b_ref[...], w1c_ref[...],
                    b1_ref[...], g1_ref[...], be1_ref[...],
                    w2_ref[...], b2_ref[...], g2_ref[...], be2_ref[...],
                    activation, norm_type, cdt)
    o_ref[0] = jnp.where(rows < valid_out, out, 0.0).astype(o_ref.dtype)


# ----------------------------------------------------------------------------
# Wrappers.
# ----------------------------------------------------------------------------
def _ensure_time_multiple(x, m):
    B, T, C = x.shape
    tp = _round_up(T, m)
    if tp != T:
        x = jnp.pad(x, ((0, 0), (0, tp - T), (0, 0)))
    return x


def _conv0_call(x, p, valid_in, *, activation, cdt):
    """First Conv1d(C0 -> D, k=3, s=2, p=1) + activation.  x: (B, T, C0) bf16."""
    # Keep pair-time axis a multiple of 8 (tiny tail pad only).
    x = _ensure_time_multiple(x, 16)
    B, T, C = x.shape
    to = T // 2
    D = p["w0"].shape[1]
    xp = x.reshape(B, to, 2 * C)          # free reshape: even/odd channel pairs
    valid_out = _ceil_div(valid_in, 2)

    flops = 2 * B * to * 3 * C * D
    bytes_accessed = B * to * (2 * C + D) * 2 + (p["w0"].size + p["w12"].size) * 2

    # TODO(synk): tile conv0 over time for extremely long sequences (single
    # time tile is fine for the typical nframes of this model).
    out = pl.pallas_call(
        functools.partial(_conv0_kernel, activation=activation,
                          valid_out=valid_out, cdt=cdt),
        out_shape=jax.ShapeDtypeStruct((B, to, D), STORE_DTYPE),
        grid=(B,),
        in_specs=[
            pl.BlockSpec((1, to, 2 * C), lambda b: (b, 0, 0)),
            pl.BlockSpec(p["w0"].shape, lambda b: (0, 0)),
            pl.BlockSpec(p["w12"].shape, lambda b: (0, 0)),
            pl.BlockSpec(p["b"].shape, lambda b: (0, 0)),
        ],
        out_specs=pl.BlockSpec((1, to, D), lambda b: (b, 0, 0)),
        compiler_params=pltpu.CompilerParams(
            dimension_semantics=("parallel",),
            vmem_limit_bytes=VMEM_LIMIT_BYTES),
        cost_estimate=pl.CostEstimate(flops=int(flops), transcendentals=0,
                                      bytes_accessed=int(bytes_accessed)),
    )(xp, p["w0"], p["w12"], p["b"])
    return out, valid_out


def _fused_layer_call(x, layer, valid_in, *, activation, norm_type, t_tile, cdt):
    """One fused trunk layer: strided conv + act + ResConv1DBlock. x: (B,T,C) bf16."""
    x = _ensure_time_multiple(x, 16)
    B, T, C = x.shape
    to = T // 2
    pconv, pres = layer["conv"], layer["res"]
    D = pconv["w0"].shape[1]
    S = pres["w1a"].shape[1]
    xp = x.reshape(B, to, 2 * C)
    valid_out = _ceil_div(valid_in, 2)
    tt = _choose_tile(to, t_tile)

    weights = (pconv["w0"], pconv["w12"], pconv["b"],
               pres["w1a"], pres["w1b"], pres["w1c"],
               pres["b1"], pres["g1"], pres["be1"],
               pres["w2"], pres["b2"], pres["g2"], pres["be2"])

    flops = 2 * B * to * (3 * C * D + 3 * D * S + S * D)
    transcend = 0 if activation == "relu" else B * to * (D + S)
    bytes_accessed = (B * to * (2 * C + D) * 2
                      + sum(int(w.size) * jnp.dtype(w.dtype).itemsize for w in weights))

    if tt == to:
        kern = functools.partial(_fused_single_kernel, activation=activation,
                                 norm_type=norm_type, valid_out=valid_out, cdt=cdt)
        grid = (B,)
        in_specs = ([pl.BlockSpec((1, to, 2 * C), lambda b: (b, 0, 0))]
                    + [pl.BlockSpec(w.shape, lambda b: (0, 0)) for w in weights])
        out_specs = pl.BlockSpec((1, to, D), lambda b: (b, 0, 0))
        args = (xp,) + weights
        dims = ("parallel",)
    else:
        nblk8 = to // 8
        blks_per_tile = tt // 8
        kern = functools.partial(_fused_tiled_kernel, activation=activation,
                                 norm_type=norm_type, valid_out=valid_out,
                                 tt=tt, cdt=cdt)
        # Time axis first so v7x's two TensorCores split the long axis.
        grid = (to // tt, B)
        in_specs = ([
            pl.BlockSpec((1, tt, 2 * C), lambda t, b: (b, t, 0)),
            pl.BlockSpec((1, 8, 2 * C),
                         lambda t, b: (b, jnp.maximum(t * blks_per_tile - 1, 0), 0)),
            pl.BlockSpec((1, 8, 2 * C),
                         lambda t, b: (b, jnp.minimum((t + 1) * blks_per_tile,
                                                      nblk8 - 1), 0)),
        ] + [pl.BlockSpec(w.shape, lambda t, b: (0, 0)) for w in weights])
        out_specs = pl.BlockSpec((1, tt, D), lambda t, b: (b, t, 0))
        args = (xp, xp, xp) + weights
        dims = ("parallel", "parallel")

    out = pl.pallas_call(
        kern,
        out_shape=jax.ShapeDtypeStruct((B, to, D), STORE_DTYPE),
        grid=grid,
        in_specs=in_specs,
        out_specs=out_specs,
        compiler_params=pltpu.CompilerParams(
            dimension_semantics=dims, vmem_limit_bytes=VMEM_LIMIT_BYTES),
        cost_estimate=pl.CostEstimate(flops=int(flops), transcendentals=int(transcend),
                                      bytes_accessed=int(bytes_accessed)),
    )(*args)
    return out, valid_out


def _adaptive_max_pool_permute(y, tn):
    """AdaptiveMaxPool1d(tn) over time + permute(2, 0, 1). y: (B, T, D) -> (tn, B, D)."""
    B, T, D = y.shape
    bins = []
    for i in range(tn):
        s = (i * T) // tn
        e = _ceil_div((i + 1) * T, tn)
        bins.append(jnp.max(y[:, s:e, :], axis=1))
    return jnp.stack(bins, axis=0)


def prepare_params(params, compute_dtype=jnp.bfloat16):
    """One-time weight repacking (tap transposes + bf16 casts), hoisted off the hot path."""
    f32 = jnp.float32

    def conv_pack(w, b):
        w0 = jnp.transpose(w[:, :, 0], (1, 0)).astype(compute_dtype)
        w12 = jnp.concatenate([jnp.transpose(w[:, :, 1], (1, 0)),
                               jnp.transpose(w[:, :, 2], (1, 0))],
                              axis=0).astype(compute_dtype)
        return {"w0": w0, "w12": w12, "b": b.reshape(1, -1).astype(f32)}

    packed = {"conv0": conv_pack(params["conv0"]["w"], params["conv0"]["b"]),
              "layers": []}
    for layer in params["layers"]:
        r = layer["res"]
        packed["layers"].append({
            "conv": conv_pack(layer["conv"]["w"], layer["conv"]["b"]),
            "res": {
                "w1a": jnp.transpose(r["w1"][:, :, 0], (1, 0)).astype(compute_dtype),
                "w1b": jnp.transpose(r["w1"][:, :, 1], (1, 0)).astype(compute_dtype),
                "w1c": jnp.transpose(r["w1"][:, :, 2], (1, 0)).astype(compute_dtype),
                "b1": r["b1"].reshape(1, -1).astype(f32),
                "g1": r["g1"].reshape(1, -1).astype(f32),
                "be1": r["be1"].reshape(1, -1).astype(f32),
                "w2": jnp.transpose(r["w2"][:, :, 0], (1, 0)).astype(compute_dtype),
                "b2": r["b2"].reshape(1, -1).astype(f32),
                "g2": r["g2"].reshape(1, -1).astype(f32),
                "be2": r["be2"].reshape(1, -1).astype(f32),
            }})
    return packed


def encoder_block_forward(x, packed, *, TN=1, activation="relu",
                          norm_type="layernorm", t_tile=512,
                          compute_dtype=jnp.bfloat16):
    """Pallas forward of Encoder_Block. x: (bs, njoints, nfeats, nframes) f32."""
    bs, nj, nf, nframes = x.shape
    # NCL -> NLC once at the model boundary; everything below stays NLC / bf16.
    h = jnp.transpose(x.reshape(bs, nj * nf, nframes), (0, 2, 1)).astype(STORE_DTYPE)
    valid = nframes
    h, valid = _conv0_call(h, packed["conv0"], valid,
                           activation=activation, cdt=compute_dtype)
    for layer in packed["layers"]:
        h, valid = _fused_layer_call(h, layer, valid, activation=activation,
                                     norm_type=norm_type, t_tile=t_tile,
                                     cdt=compute_dtype)
    # Padded rows are zero-masked; trim once to the valid length before pooling.
    h = h[:, :valid, :].astype(jnp.float32)
    # TODO(synk): AdaptiveMaxPool1d(TN) + permute are a trivial reduction/reshape;
    # kept in plain JAX rather than a dedicated kernel.
    return _adaptive_max_pool_permute(h, TN)


# ----------------------------------------------------------------------------
# Pure-JAX reference (mirrors PyTorch forward with the same bf16 numerics).
# ----------------------------------------------------------------------------
def _mm(a, b, cdt):
    return jnp.dot(a.astype(cdt), b.astype(cdt), preferred_element_type=jnp.float32)


def _ref_strided_conv_act(x, w, b, activation, cdt):
    B, T, C = x.shape
    t_out = (T - 1) // 2 + 1
    xpad = jnp.pad(x, ((0, 0), (1, 1), (0, 0)))
    taps = [xpad[:, k:k + 2 * t_out - 1:2, :] for k in range(3)]
    h = (_mm(taps[0], w[:, :, 0].T, cdt) + _mm(taps[1], w[:, :, 1].T, cdt)
         + _mm(taps[2], w[:, :, 2].T, cdt) + b.astype(jnp.float32))
    return _activate(h, activation)


def _ref_res_block(h, r, activation, norm_type, cdt):
    hpad = jnp.pad(h.astype(cdt), ((0, 0), (1, 1), (0, 0)))
    u = (_mm(hpad[:, :-2], r["w1"][:, :, 0].T, cdt)
         + _mm(hpad[:, 1:-1], r["w1"][:, :, 1].T, cdt)
         + _mm(hpad[:, 2:], r["w1"][:, :, 2].T, cdt) + r["b1"])
    u = _activate(_norm(u, r["g1"], r["be1"], norm_type), activation)
    y = _mm(u, r["w2"][:, :, 0].T, cdt) + r["b2"]
    y = _activate(_norm(y, r["g2"], r["be2"], norm_type), activation)
    return y + h


def ref_encoder_block(x, params, *, TN=1, activation="relu",
                      norm_type="layernorm", compute_dtype=jnp.bfloat16):
    bs, nj, nf, nframes = x.shape
    h = jnp.transpose(x.reshape(bs, nj * nf, nframes), (0, 2, 1)).astype(STORE_DTYPE)
    h = _ref_strided_conv_act(h, params["conv0"]["w"], params["conv0"]["b"],
                              activation, compute_dtype).astype(STORE_DTYPE)
    for layer in params["layers"]:
        g = _ref_strided_conv_act(h, layer["conv"]["w"], layer["conv"]["b"],
                                  activation, compute_dtype)
        h = _ref_res_block(g, layer["res"], activation, norm_type,
                           compute_dtype).astype(STORE_DTYPE)
    return _adaptive_max_pool_permute(h.astype(jnp.float32), TN)


# ----------------------------------------------------------------------------
# Deterministic parameter construction (PyTorch weight layouts).
# ----------------------------------------------------------------------------
def init_params(key, begin_channel, latent_dim, num_layers):
    keys = iter(jax.random.split(key, 2 + 10 * num_layers))

    def rnd(shape, scale):
        return scale * jax.random.normal(next(keys), shape, jnp.float32)

    params = {
        "conv0": {"w": rnd((latent_dim, begin_channel, 3), 0.15),
                  "b": rnd((latent_dim,), 0.1)},
        "layers": [],
    }
    for _ in range(num_layers):
        params["layers"].append({
            "conv": {"w": rnd((latent_dim, latent_dim, 3), 0.05),
                     "b": rnd((latent_dim,), 0.1)},
            "res": {"w1": rnd((latent_dim, latent_dim, 3), 0.05),
                    "b1": rnd((latent_dim,), 0.1),
                    "g1": 1.0 + rnd((latent_dim,), 0.1),
                    "be1": rnd((latent_dim,), 0.1),
                    "w2": rnd((latent_dim, latent_dim, 1), 0.05),
                    "b2": rnd((latent_dim,), 0.1),
                    "g2": 1.0 + rnd((latent_dim,), 0.1),
                    "be2": rnd((latent_dim,), 0.1)},
        })
    return params


if __name__ == "__main__":
    bs, njoints, nfeats = 2, 4, 4
    begin_channel = njoints * nfeats          # 16
    latent_dim = 128                          # lane-dense channel width
    num_layers = 2
    TN = 1

    key = jax.random.PRNGKey(0)
    kx, kp = jax.random.split(key)
    params = init_params(kp, begin_channel, latent_dim, num_layers)
    packed = prepare_params(params)

    def check(nframes, t_tile, tag):
        x = jax.random.normal(jax.random.fold_in(kx, nframes),
                              (bs, njoints, nfeats, nframes), jnp.float32)
        fwd = jax.jit(functools.partial(encoder_block_forward, TN=TN,
                                        activation="relu", norm_type="layernorm",
                                        t_tile=t_tile))
        out = jax.block_until_ready(fwd(x, packed))
        ref = jax.block_until_ready(
            ref_encoder_block(x, params, TN=TN, activation="relu",
                              norm_type="layernorm"))
        assert out.shape == (TN, bs, latent_dim), (tag, out.shape)
        assert bool(jnp.all(jnp.isfinite(out))), tag
        err = float(jnp.max(jnp.abs(out - ref)))
        assert jnp.allclose(out, ref, atol=3e-3, rtol=3e-3), (tag, err)

    check(64, 512, "single-tile")   # production-style: one time tile per layer
    check(64, 8, "multi-tile")      # forces the tiled/halo path on wider layers
    check(50, 512, "masked-tail")   # odd valid lengths: padded-row masking path
    check(50, 8, "tiled+masked")    # tiled path with a partially valid last tile
    print("KERNEL_OK")
</pallas_src>

<mosaic_0001>
module attributes {stable_mosaic.version = 11 : i64} {
  func.func @_conv0_kernel(%arg0: i32, %arg1: memref<1x32x32xbf16, #tpu.memory_space<vmem>>, %arg2: memref<16x128xbf16, #tpu.memory_space<vmem>>, %arg3: memref<32x128xbf16, #tpu.memory_space<vmem>>, %arg4: memref<1x128xf32, #tpu.memory_space<vmem>>, %arg5: memref<1x32x128xbf16, #tpu.memory_space<vmem>>) attributes {dimension_semantics = [#tpu.dimension_semantics<parallel>], iteration_bounds = array<i64: 2>, scalar_prefetch = 0 : i64, scratch_operands = 0 : i64, tpu.core_type = #tpu.core_type<tc>, window_params = [{transform_indices = @transform_0, window_bounds = array<i64: 1, 32, 32>}, {pipeline_mode = #tpu.pipeline_mode<synchronous>, transform_indices = @transform_1, window_bounds = array<i64: 16, 128>}, {pipeline_mode = #tpu.pipeline_mode<synchronous>, transform_indices = @transform_2, window_bounds = array<i64: 32, 128>}, {pipeline_mode = #tpu.pipeline_mode<synchronous>, transform_indices = @transform_3, window_bounds = array<i64: 1, 128>}, {transform_indices = @transform_4, window_bounds = array<i64: 1, 32, 128>}]} {
    %c0 = arith.constant 0 : index
    %c0_0 = arith.constant 0 : index
    %c0_1 = arith.constant 0 : index
    %0 = vector.load %arg1[%c0, %c0_0, %c0_1] : memref<1x32x32xbf16, #tpu.memory_space<vmem>>, vector<1x32x32xbf16>
    %1 = vector.shape_cast %0 : vector<1x32x32xbf16> to vector<32x32xbf16>
    %cst = arith.constant 0.000000e+00 : f32
    %2 = vector.broadcast %cst : f32 to vector<1x128xf32>
    %c0_2 = arith.constant 0 : index
    %c0_3 = arith.constant 0 : index
    %3 = vector.load %arg2[%c0_2, %c0_3] : memref<16x128xbf16, #tpu.memory_space<vmem>>, vector<16x128xbf16>
    %c0_4 = arith.constant 0 : index
    %c0_5 = arith.constant 0 : index
    %4 = vector.load %arg3[%c0_4, %c0_5] : memref<32x128xbf16, #tpu.memory_space<vmem>>, vector<32x128xbf16>
    %c0_6 = arith.constant 0 : index
    %c0_7 = arith.constant 0 : index
    %5 = vector.load %arg4[%c0_6, %c0_7] : memref<1x128xf32, #tpu.memory_space<vmem>>, vector<1x128xf32>
    %6 = vector.extract_strided_slice %1 {offsets = [0, 16], sizes = [32, 16], strides = [1, 1]} : vector<32x32xbf16> to vector<32x16xbf16>
    %cst_8 = arith.constant dense<0.000000e+00> : vector<32x128xf32>
    %7 = tpu.matmul %6, %3, %cst_8 {dimension_numbers = #tpu.dot_dimension_numbers<[1], [0], [0], [1], [0, 0, 1, 1], [], []>} : vector<32x16xbf16>, vector<16x128xbf16>, vector<32x128xf32> -> vector<32x128xf32>
    %c1_i32 = arith.constant 1 : i32
    %8 = tpu.dynamic_rotate %7 by %c1_i32 dim 0 : vector<32x128xf32>, i32 -> vector<32x128xf32>
    %9 = tpu.iota {dimensions = array<i32: 0>} : vector<32x1xi32>
    %c0_i32 = arith.constant 0 : i32
    %10 = vector.broadcast %c0_i32 : i32 to vector<32x1xi32>
    %11 = arith.cmpi eq, %9, %10 : vector<32x1xi32>
    %12 = vector.shape_cast %11 : vector<32x1xi1> to vector<32x1xi1>
    %13 = vector.broadcast %12 : vector<32x1xi1> to vector<32x128xi1>
    %14 = vector.shape_cast %2 : vector<1x128xf32> to vector<1x128xf32>
    %15 = vector.broadcast %14 : vector<1x128xf32> to vector<32x128xf32>
    %16 = arith.select %13, %15, %8 : vector<32x128xi1>, vector<32x128xf32>
    %cst_9 = arith.constant dense<0.000000e+00> : vector<32x128xf32>
    %17 = tpu.matmul %1, %4, %cst_9 {dimension_numbers = #tpu.dot_dimension_numbers<[1], [0], [0], [1], [0, 0, 1, 1], [], []>} : vector<32x32xbf16>, vector<32x128xbf16>, vector<32x128xf32> -> vector<32x128xf32>
    %18 = arith.addf %16, %17 : vector<32x128xf32>
    %19 = vector.broadcast %5 : vector<1x128xf32> to vector<32x128xf32>
    %20 = arith.addf %18, %19 : vector<32x128xf32>
    %cst_10 = arith.constant 0.000000e+00 : f32
    %21 = vector.broadcast %cst_10 : f32 to vector<32x128xf32>
    %22 = arith.maximumf %20, %21 : vector<32x128xf32>
    %23 = tpu.iota {dimensions = array<i32: 0>} : vector<32x1xi32>
    %c32_i32 = arith.constant 32 : i32
    %24 = vector.broadcast %c32_i32 : i32 to vector<32x1xi32>
    %25 = arith.cmpi slt, %23, %24 : vector<32x1xi32>
    %cst_11 = arith.constant 0.000000e+00 : f32
    %26 = vector.shape_cast %25 : vector<32x1xi1> to vector<32x1xi1>
    %27 = vector.broadcast %26 : vector<32x1xi1> to vector<32x128xi1>
    %28 = vector.broadcast %cst_11 : f32 to vector<32x128xf32>
    %29 = arith.select %27, %22, %28 : vector<32x128xi1>, vector<32x128xf32>
    %30 = arith.truncf %29 : vector<32x128xf32> to vector<32x128xbf16>
    %c0_12 = arith.constant 0 : index
    %c0_13 = arith.constant 0 : index
    %c0_14 = arith.constant 0 : index
    %31 = vector.load %arg5[%c0_12, %c0_13, %c0_14] : memref<1x32x128xbf16, #tpu.memory_space<vmem>>, vector<1x32x128xbf16>
    %32 = vector.shape_cast %31 : vector<1x32x128xbf16> to vector<32x128xbf16>
    %33 = vector.shape_cast %30 : vector<32x128xbf16> to vector<1x32x128xbf16>
    tpu.vector_store %arg5[%c0_12, %c0_13, %c0_14], %33 {strides = array<i32>} : memref<1x32x128xbf16, #tpu.memory_space<vmem>>, vector<1x32x128xbf16>,
    return
  }
  func.func @transform_0(%arg0: i32) -> (i32, i32, i32) {
    %c0_i32 = arith.constant 0 : i32
    %c0_i32_0 = arith.constant 0 : i32
    %c0_i32_1 = arith.constant 0 : i32
    return %arg0, %c0_i32, %c0_i32_0 : i32, i32, i32
  }
  func.func @transform_1(%arg0: i32) -> (i32, i32) {
    %c0_i32 = arith.constant 0 : i32
    %c0_i32_0 = arith.constant 0 : i32
    %c0_i32_1 = arith.constant 0 : i32
    return %c0_i32, %c0_i32_0 : i32, i32
  }
  func.func @transform_2(%arg0: i32) -> (i32, i32) {
    %c0_i32 = arith.constant 0 : i32
    %c0_i32_0 = arith.constant 0 : i32
    %c0_i32_1 = arith.constant 0 : i32
    return %c0_i32, %c0_i32_0 : i32, i32
  }
  func.func @transform_3(%arg0: i32) -> (i32, i32) {
    %c0_i32 = arith.constant 0 : i32
    %c0_i32_0 = arith.constant 0 : i32
    %c0_i32_1 = arith.constant 0 : i32
    return %c0_i32, %c0_i32_0 : i32, i32
  }
  func.func @transform_4(%arg0: i32) -> (i32, i32, i32) {
    %c0_i32 = arith.constant 0 : i32
    %c0_i32_0 = arith.constant 0 : i32
    %c0_i32_1 = arith.constant 0 : i32
    return %arg0, %c0_i32, %c0_i32_0 : i32, i32, i32
  }
}

module attributes {stable_mosaic.version = 11 : i64} {
  func.func @_fused_single_kernel(%arg0: i32, %arg1: memref<1x16x256xbf16, #tpu.memory_space<vmem>>, %arg2: memref<128x128xbf16, #tpu.memory_space<vmem>>, %arg3: memref<256x128xbf16, #tpu.memory_space<vmem>>, %arg4: memref<1x128xf32, #tpu.memory_space<vmem>>, %arg5: memref<128x128xbf16, #tpu.memory_space<vmem>>, %arg6: memref<128x128xbf16, #tpu.memory_space<vmem>>, %arg7: memref<128x128xbf16, #tpu.memory_space<vmem>>, %arg8: memref<1x128xf32, #tpu.memory_space<vmem>>, %arg9: memref<1x128xf32, #tpu.memory_space<vmem>>, %arg10: memref<1x128xf32, #tpu.memory_space<vmem>>, %arg11: memref<128x128xbf16, #tpu.memory_space<vmem>>, %arg12: memref<1x128xf32, #tpu.memory_space<vmem>>, %arg13: memref<1x128xf32, #tpu.memory_space<vmem>>, %arg14: memref<1x128xf32, #tpu.memory_space<vmem>>, %arg15: memref<1x16x128xbf16, #tpu.memory_space<vmem>>) attributes {dimension_semantics = [#tpu.dimension_semantics<parallel>], iteration_bounds = array<i64: 2>, scalar_prefetch = 0 : i64, scratch_operands = 0 : i64, tpu.core_type = #tpu.core_type<tc>, window_params = [{transform_indices = @transform_0, window_bounds = array<i64: 1, 16, 256>}, {pipeline_mode = #tpu.pipeline_mode<synchronous>, transform_indices = @transform_1, window_bounds = array<i64: 128, 128>}, {pipeline_mode = #tpu.pipeline_mode<synchronous>, transform_indices = @transform_2, window_bounds = array<i64: 256, 128>}, {pipeline_mode = #tpu.pipeline_mode<synchronous>, transform_indices = @transform_3, window_bounds = array<i64: 1, 128>}, {pipeline_mode = #tpu.pipeline_mode<synchronous>, transform_indices = @transform_4, window_bounds = array<i64: 128, 128>}, {pipeline_mode = #tpu.pipeline_mode<synchronous>, transform_indices = @transform_5, window_bounds = array<i64: 128, 128>}, {pipeline_mode = #tpu.pipeline_mode<synchronous>, transform_indices = @transform_6, window_bounds = array<i64: 128, 128>}, {pipeline_mode = #tpu.pipeline_mode<synchronous>, transform_indices = @transform_7, window_bounds = array<i64: 1, 128>}, {pipeline_mode = #tpu.pipeline_mode<synchronous>, transform_indices = @transform_8, window_bounds = array<i64: 1, 128>}, {pipeline_mode = #tpu.pipeline_mode<synchronous>, transform_indices = @transform_9, window_bounds = array<i64: 1, 128>}, {pipeline_mode = #tpu.pipeline_mode<synchronous>, transform_indices = @transform_10, window_bounds = array<i64: 128, 128>}, {pipeline_mode = #tpu.pipeline_mode<synchronous>, transform_indices = @transform_11, window_bounds = array<i64: 1, 128>}, {pipeline_mode = #tpu.pipeline_mode<synchronous>, transform_indices = @transform_12, window_bounds = array<i64: 1, 128>}, {pipeline_mode = #tpu.pipeline_mode<synchronous>, transform_indices = @transform_13, window_bounds = array<i64: 1, 128>}, {transform_indices = @transform_14, window_bounds = array<i64: 1, 16, 128>}]} {
    %c0 = arith.constant 0 : index
    %c0_0 = arith.constant 0 : index
    %c0_1 = arith.constant 0 : index
    %0 = vector.load %arg1[%c0, %c0_0, %c0_1] : memref<1x16x256xbf16, #tpu.memory_space<vmem>>, vector<1x16x256xbf16>
    %1 = vector.shape_cast %0 : vector<1x16x256xbf16> to vector<16x256xbf16>
    %cst = arith.constant 0.000000e+00 : f32
    %2 = vector.broadcast %cst : f32 to vector<1x128xf32>
    %c0_2 = arith.constant 0 : index
    %c0_3 = arith.constant 0 : index
    %3 = vector.load %arg2[%c0_2, %c0_3] : memref<128x128xbf16, #tpu.memory_space<vmem>>, vector<128x128xbf16>
    %c0_4 = arith.constant 0 : index
    %c0_5 = arith.constant 0 : index
    %4 = vector.load %arg3[%c0_4, %c0_5] : memref<256x128xbf16, #tpu.memory_space<vmem>>, vector<256x128xbf16>
    %c0_6 = arith.constant 0 : index
    %c0_7 = arith.constant 0 : index
    %5 = vector.load %arg4[%c0_6, %c0_7] : memref<1x128xf32, #tpu.memory_space<vmem>>, vector<1x128xf32>
    %6 = vector.extract_strided_slice %1 {offsets = [0, 128], sizes = [16, 128], strides = [1, 1]} : vector<16x256xbf16> to vector<16x128xbf16>
    %cst_8 = arith.constant dense<0.000000e+00> : vector<16x128xf32>
    %7 = tpu.matmul %6, %3, %cst_8 {dimension_numbers = #tpu.dot_dimension_numbers<[1], [0], [0], [1], [0, 0, 1, 1], [], []>} : vector<16x128xbf16>, vector<128x128xbf16>, vector<16x128xf32> -> vector<16x128xf32>
    %c1_i32 = arith.constant 1 : i32
    %8 = tpu.dynamic_rotate %7 by %c1_i32 dim 0 : vector<16x128xf32>, i32 -> vector<16x128xf32>
    %9 = tpu.iota {dimensions = array<i32: 0>} : vector<16x1xi32>
    %c0_i32 = arith.constant 0 : i32
    %10 = vector.broadcast %c0_i32 : i32 to vector<16x1xi32>
    %11 = arith.cmpi eq, %9, %10 : vector<16x1xi32>
    %12 = vector.shape_cast %11 : vector<16x1xi1> to vector<16x1xi1>
    %13 = vector.broadcast %12 : vector<16x1xi1> to vector<16x128xi1>
    %14 = vector.shape_cast %2 : vector<1x128xf32> to vector<1x128xf32>
    %15 = vector.broadcast %14 : vector<1x128xf32> to vector<16x128xf32>
    %16 = arith.select %13, %15, %8 : vector<16x128xi1>, vector<16x128xf32>
    %cst_9 = arith.constant dense<0.000000e+00> : vector<16x128xf32>
    %17 = tpu.matmul %1, %4, %cst_9 {dimension_numbers = #tpu.dot_dimension_numbers<[1], [0], [0], [1], [0, 0, 1, 1], [], []>} : vector<16x256xbf16>, vector<256x128xbf16>, vector<16x128xf32> -> vector<16x128xf32>
    %18 = arith.addf %16, %17 : vector<16x128xf32>
    %19 = vector.broadcast %5 : vector<1x128xf32> to vector<16x128xf32>
    %20 = arith.addf %18, %19 : vector<16x128xf32>
    %cst_10 = arith.constant 0.000000e+00 : f32
    %21 = vector.broadcast %cst_10 : f32 to vector<16x128xf32>
    %22 = arith.maximumf %20, %21 : vector<16x128xf32>
    %23 = tpu.iota {dimensions = array<i32: 0>} : vector<16x1xi32>
    %c16_i32 = arith.constant 16 : i32
    %24 = vector.broadcast %c16_i32 : i32 to vector<16x1xi32>
    %25 = arith.cmpi slt, %23, %24 : vector<16x1xi32>
    %cst_11 = arith.constant 0.000000e+00 : f32
    %26 = vector.shape_cast %25 : vector<16x1xi1> to vector<16x1xi1>
    %27 = vector.broadcast %26 : vector<16x1xi1> to vector<16x128xi1>
    %28 = vector.broadcast %cst_11 : f32 to vector<16x128xf32>
    %29 = arith.select %27, %22, %28 : vector<16x128xi1>, vector<16x128xf32>
    %c0_12 = arith.constant 0 : index
    %c0_13 = arith.constant 0 : index
    %30 = vector.load %arg5[%c0_12, %c0_13] : memref<128x128xbf16, #tpu.memory_space<vmem>>, vector<128x128xbf16>
    %c0_14 = arith.constant 0 : index
    %c0_15 = arith.constant 0 : index
    %31 = vector.load %arg6[%c0_14, %c0_15] : memref<128x128xbf16, #tpu.memory_space<vmem>>, vector<128x128xbf16>
    %c0_16 = arith.constant 0 : index
    %c0_17 = arith.constant 0 : index
    %32 = vector.load %arg7[%c0_16, %c0_17] : memref<128x128xbf16, #tpu.memory_space<vmem>>, vector<128x128xbf16>
    %c0_18 = arith.constant 0 : index
    %c0_19 = arith.constant 0 : index
    %33 = vector.load %arg8[%c0_18, %c0_19] : memref<1x128xf32, #tpu.memory_space<vmem>>, vector<1x128xf32>
    %c0_20 = arith.constant 0 : index
    %c0_21 = arith.constant 0 : index
    %34 = vector.load %arg9[%c0_20, %c0_21] : memref<1x128xf32, #tpu.memory_space<vmem>>, vector<1x128xf32>
    %c0_22 = arith.constant 0 : index
    %c0_23 = arith.constant 0 : index
    %35 = vector.load %arg10[%c0_22, %c0_23] : memref<1x128xf32, #tpu.memory_space<vmem>>, vector<1x128xf32>
    %c0_24 = arith.constant 0 : index
    %c0_25 = arith.constant 0 : index
    %36 = vector.load %arg11[%c0_24, %c0_25] : memref<128x128xbf16, #tpu.memory_space<vmem>>, vector<128x128xbf16>
    %c0_26 = arith.constant 0 : index
    %c0_27 = arith.constant 0 : index
    %37 = vector.load %arg12[%c0_26, %c0_27] : memref<1x128xf32, #tpu.memory_space<vmem>>, vector<1x128xf32>
    %c0_28 = arith.constant 0 : index
    %c0_29 = arith.constant 0 : index
    %38 = vector.load %arg13[%c0_28, %c0_29] : memref<1x128xf32, #tpu.memory_space<vmem>>, vector<1x128xf32>
    %c0_30 = arith.constant 0 : index
    %c0_31 = arith.constant 0 : index
    %39 = vector.load %arg14[%c0_30, %c0_31] : memref<1x128xf32, #tpu.memory_space<vmem>>, vector<1x128xf32>
    %c1_i32_32 = arith.constant 1 : i32
    %40 = tpu.dynamic_rotate %29 by %c1_i32_32 dim 0 : vector<16x128xf32>, i32 -> vector<16x128xf32>
    %41 = tpu.iota {dimensions = array<i32: 0>} : vector<16x1xi32>
    %c0_i32_33 = arith.constant 0 : i32
    %42 = vector.broadcast %c0_i32_33 : i32 to vector<16x1xi32>
    %43 = arith.cmpi eq, %41, %42 : vector<16x1xi32>
    %44 = vector.shape_cast %43 : vector<16x1xi1> to vector<16x1xi1>
    %45 = vector.broadcast %44 : vector<16x1xi1> to vector<16x128xi1>
    %46 = vector.shape_cast %2 : vector<1x128xf32> to vector<1x128xf32>
    %47 = vector.broadcast %46 : vector<1x128xf32> to vector<16x128xf32>
    %48 = arith.select %45, %47, %40 : vector<16x128xi1>, vector<16x128xf32>
    %c15_i32 = arith.constant 15 : i32
    %49 = tpu.dynamic_rotate %29 by %c15_i32 dim 0 : vector<16x128xf32>, i32 -> vector<16x128xf32>
    %50 = tpu.iota {dimensions = array<i32: 0>} : vector<16x1xi32>
    %c15_i32_34 = arith.constant 15 : i32
    %51 = vector.broadcast %c15_i32_34 : i32 to vector<16x1xi32>
    %52 = arith.cmpi eq, %50, %51 : vector<16x1xi32>
    %53 = vector.shape_cast %52 : vector<16x1xi1> to vector<16x1xi1>
    %54 = vector.broadcast %53 : vector<16x1xi1> to vector<16x128xi1>
    %55 = vector.shape_cast %2 : vector<1x128xf32> to vector<1x128xf32>
    %56 = vector.broadcast %55 : vector<1x128xf32> to vector<16x128xf32>
    %57 = arith.select %54, %56, %49 : vector<16x128xi1>, vector<16x128xf32>
    %58 = arith.truncf %48 : vector<16x128xf32> to vector<16x128xbf16>
    %cst_35 = arith.constant dense<0.000000e+00> : vector<16x128xf32>
    %59 = tpu.matmul %58, %30, %cst_35 {dimension_numbers = #tpu.dot_dimension_numbers<[1], [0], [0], [1], [0, 0, 1, 1], [], []>} : vector<16x128xbf16>, vector<128x128xbf16>, vector<16x128xf32> -> vector<16x128xf32>
    %60 = arith.truncf %29 : vector<16x128xf32> to vector<16x128xbf16>
    %cst_36 = arith.constant dense<0.000000e+00> : vector<16x128xf32>
    %61 = tpu.matmul %60, %31, %cst_36 {dimension_numbers = #tpu.dot_dimension_numbers<[1], [0], [0], [1], [0, 0, 1, 1], [], []>} : vector<16x128xbf16>, vector<128x128xbf16>, vector<16x128xf32> -> vector<16x128xf32>
    %62 = arith.addf %59, %61 : vector<16x128xf32>
    %63 = arith.truncf %57 : vector<16x128xf32> to vector<16x128xbf16>
    %cst_37 = arith.constant dense<0.000000e+00> : vector<16x128xf32>
    %64 = tpu.matmul %63, %32, %cst_37 {dimension_numbers = #tpu.dot_dimension_numbers<[1], [0], [0], [1], [0, 0, 1, 1], [], []>} : vector<16x128xbf16>, vector<128x128xbf16>, vector<16x128xf32> -> vector<16x128xf32>
    %65 = arith.addf %62, %64 : vector<16x128xf32>
    %66 = vector.broadcast %33 : vector<1x128xf32> to vector<16x128xf32>
    %67 = arith.addf %65, %66 : vector<16x128xf32>
    %cst_38 = arith.constant dense<0.000000e+00> : vector<16xf32>
    %68 = vector.multi_reduction <add>, %67, %cst_38 [1] : vector<16x128xf32> to vector<16xf32>
    %69 = vector.shape_cast %68 : vector<16xf32> to vector<16x1xf32>
    %cst_39 = arith.constant 1.280000e+02 : f32
    %70 = vector.broadcast %cst_39 : f32 to vector<16x1xf32>
    %71 = arith.divf %69, %70 : vector<16x1xf32>
    %72 = vector.broadcast %71 : vector<16x1xf32> to vector<16x128xf32>
    %73 = arith.subf %67, %72 : vector<16x128xf32>
    %74 = arith.mulf %73, %73 : vector<16x128xf32>
    %cst_40 = arith.constant dense<0.000000e+00> : vector<16xf32>
    %75 = vector.multi_reduction <add>, %74, %cst_40 [1] : vector<16x128xf32> to vector<16xf32>
    %76 = vector.shape_cast %75 : vector<16xf32> to vector<16x1xf32>
    %cst_41 = arith.constant 1.280000e+02 : f32
    %77 = vector.broadcast %cst_41 : f32 to vector<16x1xf32>
    %78 = arith.divf %76, %77 : vector<16x1xf32>
    %cst_42 = arith.constant 9.99999974E-6 : f32
    %79 = vector.broadcast %cst_42 : f32 to vector<16x1xf32>
    %80 = arith.addf %78, %79 : vector<16x1xf32>
    %81 = math.rsqrt %80 : vector<16x1xf32>
    %82 = vector.broadcast %81 : vector<16x1xf32> to vector<16x128xf32>
    %83 = arith.mulf %73, %82 : vector<16x128xf32>
    %84 = vector.broadcast %34 : vector<1x128xf32> to vector<16x128xf32>
    %85 = arith.mulf %83, %84 : vector<16x128xf32>
    %86 = vector.broadcast %35 : vector<1x128xf32> to vector<16x128xf32>
    %87 = arith.addf %85, %86 : vector<16x128xf32>
    %cst_43 = arith.constant 0.000000e+00 : f32
    %88 = vector.broadcast %cst_43 : f32 to vector<16x128xf32>
    %89 = arith.maximumf %87, %88 : vector<16x128xf32>
    %90 = arith.truncf %89 : vector<16x128xf32> to vector<16x128xbf16>
    %cst_44 = arith.constant dense<0.000000e+00> : vector<16x128xf32>
    %91 = tpu.matmul %90, %36, %cst_44 {dimension_numbers = #tpu.dot_dimension_numbers<[1], [0], [0], [1], [0, 0, 1, 1], [], []>} : vector<16x128xbf16>, vector<128x128xbf16>, vector<16x128xf32> -> vector<16x128xf32>
    %92 = vector.broadcast %37 : vector<1x128xf32> to vector<16x128xf32>
    %93 = arith.addf %91, %92 : vector<16x128xf32>
    %cst_45 = arith.constant dense<0.000000e+00> : vector<16xf32>
    %94 = vector.multi_reduction <add>, %93, %cst_45 [1] : vector<16x128xf32> to vector<16xf32>
    %95 = vector.shape_cast %94 : vector<16xf32> to vector<16x1xf32>
    %cst_46 = arith.constant 1.280000e+02 : f32
    %96 = vector.broadcast %cst_46 : f32 to vector<16x1xf32>
    %97 = arith.divf %95, %96 : vector<16x1xf32>
    %98 = vector.broadcast %97 : vector<16x1xf32> to vector<16x128xf32>
    %99 = arith.subf %93, %98 : vector<16x128xf32>
    %100 = arith.mulf %99, %99 : vector<16x128xf32>
    %cst_47 = arith.constant dense<0.000000e+00> : vector<16xf32>
    %101 = vector.multi_reduction <add>, %100, %cst_47 [1] : vector<16x128xf32> to vector<16xf32>
    %102 = vector.shape_cast %101 : vector<16xf32> to vector<16x1xf32>
    %cst_48 = arith.constant 1.280000e+02 : f32
    %103 = vector.broadcast %cst_48 : f32 to vector<16x1xf32>
    %104 = arith.divf %102, %103 : vector<16x1xf32>
    %cst_49 = arith.constant 9.99999974E-6 : f32
    %105 = vector.broadcast %cst_49 : f32 to vector<16x1xf32>
    %106 = arith.addf %104, %105 : vector<16x1xf32>
    %107 = math.rsqrt %106 : vector<16x1xf32>
    %108 = vector.broadcast %107 : vector<16x1xf32> to vector<16x128xf32>
    %109 = arith.mulf %99, %108 : vector<16x128xf32>
    %110 = vector.broadcast %38 : vector<1x128xf32> to vector<16x128xf32>
    %111 = arith.mulf %109, %110 : vector<16x128xf32>
    %112 = vector.broadcast %39 : vector<1x128xf32> to vector<16x128xf32>
    %113 = arith.addf %111, %112 : vector<16x128xf32>
    %cst_50 = arith.constant 0.000000e+00 : f32
    %114 = vector.broadcast %cst_50 : f32 to vector<16x128xf32>
    %115 = arith.maximumf %113, %114 : vector<16x128xf32>
    %116 = arith.addf %115, %29 : vector<16x128xf32>
    %c16_i32_51 = arith.constant 16 : i32
    %117 = vector.broadcast %c16_i32_51 : i32 to vector<16x1xi32>
    %118 = arith.cmpi slt, %23, %117 : vector<16x1xi32>
    %cst_52 = arith.constant 0.000000e+00 : f32
    %119 = vector.shape_cast %118 : vector<16x1xi1> to vector<16x1xi1>
    %120 = vector.broadcast %119 : vector<16x1xi1> to vector<16x128xi1>
    %121 = vector.broadcast %cst_52 : f32 to vector<16x128xf32>
    %122 = arith.select %120, %116, %121 : vector<16x128xi1>, vector<16x128xf32>
    %123 = arith.truncf %122 : vector<16x128xf32> to vector<16x128xbf16>
    %c0_53 = arith.constant 0 : index
    %c0_54 = arith.constant 0 : index
    %c0_55 = arith.constant 0 : index
    %124 = vector.load %arg15[%c0_53, %c0_54, %c0_55] : memref<1x16x128xbf16, #tpu.memory_space<vmem>>, vector<1x16x128xbf16>
    %125 = vector.shape_cast %124 : vector<1x16x128xbf16> to vector<16x128xbf16>
    %126 = vector.shape_cast %123 : vector<16x128xbf16> to vector<1x16x128xbf16>
    tpu.vector_store %arg15[%c0_53, %c0_54, %c0_55], %126 {strides = array<i32>} : memref<1x16x128xbf16, #tpu.memory_space<vmem>>, vector<1x16x128xbf16>,
    return
  }
  func.func @transform_0(%arg0: i32) -> (i32, i32, i32) {
    %c0_i32 = arith.constant 0 : i32
    %c0_i32_0 = arith.constant 0 : i32
    %c0_i32_1 = arith.constant 0 : i32
    return %arg0, %c0_i32, %c0_i32_0 : i32, i32, i32
  }
  func.func @transform_1(%arg0: i32) -> (i32, i32) {
    %c0_i32 = arith.constant 0 : i32
    %c0_i32_0 = arith.constant 0 : i32
    %c0_i32_1 = arith.constant 0 : i32
    return %c0_i32, %c0_i32_0 : i32, i32
  }
  func.func @transform_2(%arg0: i32) -> (i32, i32) {
    %c0_i32 = arith.constant 0 : i32
    %c0_i32_0 = arith.constant 0 : i32
    %c0_i32_1 = arith.constant 0 : i32
    return %c0_i32, %c0_i32_0 : i32, i32
  }
  func.func @transform_3(%arg0: i32) -> (i32, i32) {
    %c0_i32 = arith.constant 0 : i32
    %c0_i32_0 = arith.constant 0 : i32
    %c0_i32_1 = arith.constant 0 : i32
    return %c0_i32, %c0_i32_0 : i32, i32
  }
  func.func @transform_4(%arg0: i32) -> (i32, i32) {
    %c0_i32 = arith.constant 0 : i32
    %c0_i32_0 = arith.constant 0 : i32
    %c0_i32_1 = arith.constant 0 : i32
    return %c0_i32, %c0_i32_0 : i32, i32
  }
  func.func @transform_5(%arg0: i32) -> (i32, i32) {
    %c0_i32 = arith.constant 0 : i32
    %c0_i32_0 = arith.constant 0 : i32
    %c0_i32_1 = arith.constant 0 : i32
    return %c0_i32, %c0_i32_0 : i32, i32
  }
  func.func @transform_6(%arg0: i32) -> (i32, i32) {
    %c0_i32 = arith.constant 0 : i32
    %c0_i32_0 = arith.constant 0 : i32
    %c0_i32_1 = arith.constant 0 : i32
    return %c0_i32, %c0_i32_0 : i32, i32
  }
  func.func @transform_7(%arg0: i32) -> (i32, i32) {
    %c0_i32 = arith.constant 0 : i32
    %c0_i32_0 = arith.constant 0 : i32
    %c0_i32_1 = arith.constant 0 : i32
    return %c0_i32, %c0_i32_0 : i32, i32
  }
  func.func @transform_8(%arg0: i32) -> (i32, i32) {
    %c0_i32 = arith.constant 0 : i32
    %c0_i32_0 = arith.constant 0 : i32
    %c0_i32_1 = arith.constant 0 : i32
    return %c0_i32, %c0_i32_0 : i32, i32
  }
  func.func @transform_9(%arg0: i32) -> (i32, i32) {
    %c0_i32 = arith.constant 0 : i32
    %c0_i32_0 = arith.constant 0 : i32
    %c0_i32_1 = arith.constant 0 : i32
    return %c0_i32, %c0_i32_0 : i32, i32
  }
  func.func @transform_10(%arg0: i32) -> (i32, i32) {
    %c0_i32 = arith.constant 0 : i32
    %c0_i32_0 = arith.constant 0 : i32
    %c0_i32_1 = arith.constant 0 : i32
    return %c0_i32, %c0_i32_0 : i32, i32
  }
  func.func @transform_11(%arg0: i32) -> (i32, i32) {
    %c0_i32 = arith.constant 0 : i32
    %c0_i32_0 = arith.constant 0 : i32
    %c0_i32_1 = arith.constant 0 : i32
    return %c0_i32, %c0_i32_0 : i32, i32
  }
  func.func @transform_12(%arg0: i32) -> (i32, i32) {
    %c0_i32 = arith.constant 0 : i32
    %c0_i32_0 = arith.constant 0 : i32
    %c0_i32_1 = arith.constant 0 : i32
    return %c0_i32, %c0_i32_0 : i32, i32
  }
  func.func @transform_13(%arg0: i32) -> (i32, i32) {
    %c0_i32 = arith.constant 0 : i32
    %c0_i32_0 = arith.constant 0 : i32
    %c0_i32_1 = arith.constant 0 : i32
    return %c0_i32, %c0_i32_0 : i32, i32
  }
  func.func @transform_14(%arg0: i32) -> (i32, i32, i32) {
    %c0_i32 = arith.constant 0 : i32
    %c0_i32_0 = arith.constant 0 : i32
    %c0_i32_1 = arith.constant 0 : i32
    return %arg0, %c0_i32, %c0_i32_0 : i32, i32, i32
  }
}

module attributes {stable_mosaic.version = 11 : i64} {
  func.func @_fused_single_kernel(%arg0: i32, %arg1: memref<1x8x256xbf16, #tpu.memory_space<vmem>>, %arg2: memref<128x128xbf16, #tpu.memory_space<vmem>>, %arg3: memref<256x128xbf16, #tpu.memory_space<vmem>>, %arg4: memref<1x128xf32, #tpu.memory_space<vmem>>, %arg5: memref<128x128xbf16, #tpu.memory_space<vmem>>, %arg6: memref<128x128xbf16, #tpu.memory_space<vmem>>, %arg7: memref<128x128xbf16, #tpu.memory_space<vmem>>, %arg8: memref<1x128xf32, #tpu.memory_space<vmem>>, %arg9: memref<1x128xf32, #tpu.memory_space<vmem>>, %arg10: memref<1x128xf32, #tpu.memory_space<vmem>>, %arg11: memref<128x128xbf16, #tpu.memory_space<vmem>>, %arg12: memref<1x128xf32, #tpu.memory_space<vmem>>, %arg13: memref<1x128xf32, #tpu.memory_space<vmem>>, %arg14: memref<1x128xf32, #tpu.memory_space<vmem>>, %arg15: memref<1x8x128xbf16, #tpu.memory_space<vmem>>) attributes {dimension_semantics = [#tpu.dimension_semantics<parallel>], iteration_bounds = array<i64: 2>, scalar_prefetch = 0 : i64, scratch_operands = 0 : i64, tpu.core_type = #tpu.core_type<tc>, window_params = [{transform_indices = @transform_0, window_bounds = array<i64: 1, 8, 256>}, {pipeline_mode = #tpu.pipeline_mode<synchronous>, transform_indices = @transform_1, window_bounds = array<i64: 128, 128>}, {pipeline_mode = #tpu.pipeline_mode<synchronous>, transform_indices = @transform_2, window_bounds = array<i64: 256, 128>}, {pipeline_mode = #tpu.pipeline_mode<synchronous>, transform_indices = @transform_3, window_bounds = array<i64: 1, 128>}, {pipeline_mode = #tpu.pipeline_mode<synchronous>, transform_indices = @transform_4, window_bounds = array<i64: 128, 128>}, {pipeline_mode = #tpu.pipeline_mode<synchronous>, transform_indices = @transform_5, window_bounds = array<i64: 128, 128>}, {pipeline_mode = #tpu.pipeline_mode<synchronous>, transform_indices = @transform_6, window_bounds = array<i64: 128, 128>}, {pipeline_mode = #tpu.pipeline_mode<synchronous>, transform_indices = @transform_7, window_bounds = array<i64: 1, 128>}, {pipeline_mode = #tpu.pipeline_mode<synchronous>, transform_indices = @transform_8, window_bounds = array<i64: 1, 128>}, {pipeline_mode = #tpu.pipeline_mode<synchronous>, transform_indices = @transform_9, window_bounds = array<i64: 1, 128>}, {pipeline_mode = #tpu.pipeline_mode<synchronous>, transform_indices = @transform_10, window_bounds = array<i64: 128, 128>}, {pipeline_mode = #tpu.pipeline_mode<synchronous>, transform_indices = @transform_11, window_bounds = array<i64: 1, 128>}, {pipeline_mode = #tpu.pipeline_mode<synchronous>, transform_indices = @transform_12, window_bounds = array<i64: 1, 128>}, {pipeline_mode = #tpu.pipeline_mode<synchronous>, transform_indices = @transform_13, window_bounds = array<i64: 1, 128>}, {transform_indices = @transform_14, window_bounds = array<i64: 1, 8, 128>}]} {
    %c0 = arith.constant 0 : index
    %c0_0 = arith.constant 0 : index
    %c0_1 = arith.constant 0 : index
    %0 = vector.load %arg1[%c0, %c0_0, %c0_1] : memref<1x8x256xbf16, #tpu.memory_space<vmem>>, vector<1x8x256xbf16>
    %1 = vector.shape_cast %0 : vector<1x8x256xbf16> to vector<8x256xbf16>
    %cst = arith.constant 0.000000e+00 : f32
    %2 = vector.broadcast %cst : f32 to vector<1x128xf32>
    %c0_2 = arith.constant 0 : index
    %c0_3 = arith.constant 0 : index
    %3 = vector.load %arg2[%c0_2, %c0_3] : memref<128x128xbf16, #tpu.memory_space<vmem>>, vector<128x128xbf16>
    %c0_4 = arith.constant 0 : index
    %c0_5 = arith.constant 0 : index
    %4 = vector.load %arg3[%c0_4, %c0_5] : memref<256x128xbf16, #tpu.memory_space<vmem>>, vector<256x128xbf16>
    %c0_6 = arith.constant 0 : index
    %c0_7 = arith.constant 0 : index
    %5 = vector.load %arg4[%c0_6, %c0_7] : memref<1x128xf32, #tpu.memory_space<vmem>>, vector<1x128xf32>
    %6 = vector.extract_strided_slice %1 {offsets = [0, 128], sizes = [8, 128], strides = [1, 1]} : vector<8x256xbf16> to vector<8x128xbf16>
    %cst_8 = arith.constant dense<0.000000e+00> : vector<8x128xf32>
    %7 = tpu.matmul %6, %3, %cst_8 {dimension_numbers = #tpu.dot_dimension_numbers<[1], [0], [0], [1], [0, 0, 1, 1], [], []>} : vector<8x128xbf16>, vector<128x128xbf16>, vector<8x128xf32> -> vector<8x128xf32>
    %c1_i32 = arith.constant 1 : i32
    %8 = tpu.dynamic_rotate %7 by %c1_i32 dim 0 : vector<8x128xf32>, i32 -> vector<8x128xf32>
    %9 = tpu.iota {dimensions = array<i32: 0>} : vector<8x1xi32>
    %c0_i32 = arith.constant 0 : i32
    %10 = vector.broadcast %c0_i32 : i32 to vector<8x1xi32>
    %11 = arith.cmpi eq, %9, %10 : vector<8x1xi32>
    %12 = vector.shape_cast %11 : vector<8x1xi1> to vector<8x1xi1>
    %13 = vector.broadcast %12 : vector<8x1xi1> to vector<8x128xi1>
    %14 = vector.shape_cast %2 : vector<1x128xf32> to vector<1x128xf32>
    %15 = vector.broadcast %14 : vector<1x128xf32> to vector<8x128xf32>
    %16 = arith.select %13, %15, %8 : vector<8x128xi1>, vector<8x128xf32>
    %cst_9 = arith.constant dense<0.000000e+00> : vector<8x128xf32>
    %17 = tpu.matmul %1, %4, %cst_9 {dimension_numbers = #tpu.dot_dimension_numbers<[1], [0], [0], [1], [0, 0, 1, 1], [], []>} : vector<8x256xbf16>, vector<256x128xbf16>, vector<8x128xf32> -> vector<8x128xf32>
    %18 = arith.addf %16, %17 : vector<8x128xf32>
    %19 = vector.broadcast %5 : vector<1x128xf32> to vector<8x128xf32>
    %20 = arith.addf %18, %19 : vector<8x128xf32>
    %cst_10 = arith.constant 0.000000e+00 : f32
    %21 = vector.broadcast %cst_10 : f32 to vector<8x128xf32>
    %22 = arith.maximumf %20, %21 : vector<8x128xf32>
    %23 = tpu.iota {dimensions = array<i32: 0>} : vector<8x1xi32>
    %c8_i32 = arith.constant 8 : i32
    %24 = vector.broadcast %c8_i32 : i32 to vector<8x1xi32>
    %25 = arith.cmpi slt, %23, %24 : vector<8x1xi32>
    %cst_11 = arith.constant 0.000000e+00 : f32
    %26 = vector.shape_cast %25 : vector<8x1xi1> to vector<8x1xi1>
    %27 = vector.broadcast %26 : vector<8x1xi1> to vector<8x128xi1>
    %28 = vector.broadcast %cst_11 : f32 to vector<8x128xf32>
    %29 = arith.select %27, %22, %28 : vector<8x128xi1>, vector<8x128xf32>
    %c0_12 = arith.constant 0 : index
    %c0_13 = arith.constant 0 : index
    %30 = vector.load %arg5[%c0_12, %c0_13] : memref<128x128xbf16, #tpu.memory_space<vmem>>, vector<128x128xbf16>
    %c0_14 = arith.constant 0 : index
    %c0_15 = arith.constant 0 : index
    %31 = vector.load %arg6[%c0_14, %c0_15] : memref<128x128xbf16, #tpu.memory_space<vmem>>, vector<128x128xbf16>
    %c0_16 = arith.constant 0 : index
    %c0_17 = arith.constant 0 : index
    %32 = vector.load %arg7[%c0_16, %c0_17] : memref<128x128xbf16, #tpu.memory_space<vmem>>, vector<128x128xbf16>
    %c0_18 = arith.constant 0 : index
    %c0_19 = arith.constant 0 : index
    %33 = vector.load %arg8[%c0_18, %c0_19] : memref<1x128xf32, #tpu.memory_space<vmem>>, vector<1x128xf32>
    %c0_20 = arith.constant 0 : index
    %c0_21 = arith.constant 0 : index
    %34 = vector.load %arg9[%c0_20, %c0_21] : memref<1x128xf32, #tpu.memory_space<vmem>>, vector<1x128xf32>
    %c0_22 = arith.constant 0 : index
    %c0_23 = arith.constant 0 : index
    %35 = vector.load %arg10[%c0_22, %c0_23] : memref<1x128xf32, #tpu.memory_space<vmem>>, vector<1x128xf32>
    %c0_24 = arith.constant 0 : index
    %c0_25 = arith.constant 0 : index
    %36 = vector.load %arg11[%c0_24, %c0_25] : memref<128x128xbf16, #tpu.memory_space<vmem>>, vector<128x128xbf16>
    %c0_26 = arith.constant 0 : index
    %c0_27 = arith.constant 0 : index
    %37 = vector.load %arg12[%c0_26, %c0_27] : memref<1x128xf32, #tpu.memory_space<vmem>>, vector<1x128xf32>
    %c0_28 = arith.constant 0 : index
    %c0_29 = arith.constant 0 : index
    %38 = vector.load %arg13[%c0_28, %c0_29] : memref<1x128xf32, #tpu.memory_space<vmem>>, vector<1x128xf32>
    %c0_30 = arith.constant 0 : index
    %c0_31 = arith.constant 0 : index
    %39 = vector.load %arg14[%c0_30, %c0_31] : memref<1x128xf32, #tpu.memory_space<vmem>>, vector<1x128xf32>
    %c1_i32_32 = arith.constant 1 : i32
    %40 = tpu.dynamic_rotate %29 by %c1_i32_32 dim 0 : vector<8x128xf32>, i32 -> vector<8x128xf32>
    %41 = tpu.iota {dimensions = array<i32: 0>} : vector<8x1xi32>
    %c0_i32_33 = arith.constant 0 : i32
    %42 = vector.broadcast %c0_i32_33 : i32 to vector<8x1xi32>
    %43 = arith.cmpi eq, %41, %42 : vector<8x1xi32>
    %44 = vector.shape_cast %43 : vector<8x1xi1> to vector<8x1xi1>
    %45 = vector.broadcast %44 : vector<8x1xi1> to vector<8x128xi1>
    %46 = vector.shape_cast %2 : vector<1x128xf32> to vector<1x128xf32>
    %47 = vector.broadcast %46 : vector<1x128xf32> to vector<8x128xf32>
    %48 = arith.select %45, %47, %40 : vector<8x128xi1>, vector<8x128xf32>
    %c7_i32 = arith.constant 7 : i32
    %49 = tpu.dynamic_rotate %29 by %c7_i32 dim 0 : vector<8x128xf32>, i32 -> vector<8x128xf32>
    %50 = tpu.iota {dimensions = array<i32: 0>} : vector<8x1xi32>
    %c7_i32_34 = arith.constant 7 : i32
    %51 = vector.broadcast %c7_i32_34 : i32 to vector<8x1xi32>
    %52 = arith.cmpi eq, %50, %51 : vector<8x1xi32>
    %53 = vector.shape_cast %52 : vector<8x1xi1> to vector<8x1xi1>
    %54 = vector.broadcast %53 : vector<8x1xi1> to vector<8x128xi1>
    %55 = vector.shape_cast %2 : vector<1x128xf32> to vector<1x128xf32>
    %56 = vector.broadcast %55 : vector<1x128xf32> to vector<8x128xf32>
    %57 = arith.select %54, %56, %49 : vector<8x128xi1>, vector<8x128xf32>
    %58 = arith.truncf %48 : vector<8x128xf32> to vector<8x128xbf16>
    %cst_35 = arith.constant dense<0.000000e+00> : vector<8x128xf32>
    %59 = tpu.matmul %58, %30, %cst_35 {dimension_numbers = #tpu.dot_dimension_numbers<[1], [0], [0], [1], [0, 0, 1, 1], [], []>} : vector<8x128xbf16>, vector<128x128xbf16>, vector<8x128xf32> -> vector<8x128xf32>
    %60 = arith.truncf %29 : vector<8x128xf32> to vector<8x128xbf16>
    %cst_36 = arith.constant dense<0.000000e+00> : vector<8x128xf32>
    %61 = tpu.matmul %60, %31, %cst_36 {dimension_numbers = #tpu.dot_dimension_numbers<[1], [0], [0], [1], [0, 0, 1, 1], [], []>} : vector<8x128xbf16>, vector<128x128xbf16>, vector<8x128xf32> -> vector<8x128xf32>
    %62 = arith.addf %59, %61 : vector<8x128xf32>
    %63 = arith.truncf %57 : vector<8x128xf32> to vector<8x128xbf16>
    %cst_37 = arith.constant dense<0.000000e+00> : vector<8x128xf32>
    %64 = tpu.matmul %63, %32, %cst_37 {dimension_numbers = #tpu.dot_dimension_numbers<[1], [0], [0], [1], [0, 0, 1, 1], [], []>} : vector<8x128xbf16>, vector<128x128xbf16>, vector<8x128xf32> -> vector<8x128xf32>
    %65 = arith.addf %62, %64 : vector<8x128xf32>
    %66 = vector.broadcast %33 : vector<1x128xf32> to vector<8x128xf32>
    %67 = arith.addf %65, %66 : vector<8x128xf32>
    %cst_38 = arith.constant dense<0.000000e+00> : vector<8xf32>
    %68 = vector.multi_reduction <add>, %67, %cst_38 [1] : vector<8x128xf32> to vector<8xf32>
    %69 = vector.shape_cast %68 : vector<8xf32> to vector<8x1xf32>
    %cst_39 = arith.constant 1.280000e+02 : f32
    %70 = vector.broadcast %cst_39 : f32 to vector<8x1xf32>
    %71 = arith.divf %69, %70 : vector<8x1xf32>
    %72 = vector.broadcast %71 : vector<8x1xf32> to vector<8x128xf32>
    %73 = arith.subf %67, %72 : vector<8x128xf32>
    %74 = arith.mulf %73, %73 : vector<8x128xf32>
    %cst_40 = arith.constant dense<0.000000e+00> : vector<8xf32>
    %75 = vector.multi_reduction <add>, %74, %cst_40 [1] : vector<8x128xf32> to vector<8xf32>
    %76 = vector.shape_cast %75 : vector<8xf32> to vector<8x1xf32>
    %cst_41 = arith.constant 1.280000e+02 : f32
    %77 = vector.broadcast %cst_41 : f32 to vector<8x1xf32>
    %78 = arith.divf %76, %77 : vector<8x1xf32>
    %cst_42 = arith.constant 9.99999974E-6 : f32
    %79 = vector.broadcast %cst_42 : f32 to vector<8x1xf32>
    %80 = arith.addf %78, %79 : vector<8x1xf32>
    %81 = math.rsqrt %80 : vector<8x1xf32>
    %82 = vector.broadcast %81 : vector<8x1xf32> to vector<8x128xf32>
    %83 = arith.mulf %73, %82 : vector<8x128xf32>
    %84 = vector.broadcast %34 : vector<1x128xf32> to vector<8x128xf32>
    %85 = arith.mulf %83, %84 : vector<8x128xf32>
    %86 = vector.broadcast %35 : vector<1x128xf32> to vector<8x128xf32>
    %87 = arith.addf %85, %86 : vector<8x128xf32>
    %cst_43 = arith.constant 0.000000e+00 : f32
    %88 = vector.broadcast %cst_43 : f32 to vector<8x128xf32>
    %89 = arith.maximumf %87, %88 : vector<8x128xf32>
    %90 = arith.truncf %89 : vector<8x128xf32> to vector<8x128xbf16>
    %cst_44 = arith.constant dense<0.000000e+00> : vector<8x128xf32>
    %91 = tpu.matmul %90, %36, %cst_44 {dimension_numbers = #tpu.dot_dimension_numbers<[1], [0], [0], [1], [0, 0, 1, 1], [], []>} : vector<8x128xbf16>, vector<128x128xbf16>, vector<8x128xf32> -> vector<8x128xf32>
    %92 = vector.broadcast %37 : vector<1x128xf32> to vector<8x128xf32>
    %93 = arith.addf %91, %92 : vector<8x128xf32>
    %cst_45 = arith.constant dense<0.000000e+00> : vector<8xf32>
    %94 = vector.multi_reduction <add>, %93, %cst_45 [1] : vector<8x128xf32> to vector<8xf32>
    %95 = vector.shape_cast %94 : vector<8xf32> to vector<8x1xf32>
    %cst_46 = arith.constant 1.280000e+02 : f32
    %96 = vector.broadcast %cst_46 : f32 to vector<8x1xf32>
    %97 = arith.divf %95, %96 : vector<8x1xf32>
    %98 = vector.broadcast %97 : vector<8x1xf32> to vector<8x128xf32>
    %99 = arith.subf %93, %98 : vector<8x128xf32>
    %100 = arith.mulf %99, %99 : vector<8x128xf32>
    %cst_47 = arith.constant dense<0.000000e+00> : vector<8xf32>
    %101 = vector.multi_reduction <add>, %100, %cst_47 [1] : vector<8x128xf32> to vector<8xf32>
    %102 = vector.shape_cast %101 : vector<8xf32> to vector<8x1xf32>
    %cst_48 = arith.constant 1.280000e+02 : f32
    %103 = vector.broadcast %cst_48 : f32 to vector<8x1xf32>
    %104 = arith.divf %102, %103 : vector<8x1xf32>
    %cst_49 = arith.constant 9.99999974E-6 : f32
    %105 = vector.broadcast %cst_49 : f32 to vector<8x1xf32>
    %106 = arith.addf %104, %105 : vector<8x1xf32>
    %107 = math.rsqrt %106 : vector<8x1xf32>
    %108 = vector.broadcast %107 : vector<8x1xf32> to vector<8x128xf32>
    %109 = arith.mulf %99, %108 : vector<8x128xf32>
    %110 = vector.broadcast %38 : vector<1x128xf32> to vector<8x128xf32>
    %111 = arith.mulf %109, %110 : vector<8x128xf32>
    %112 = vector.broadcast %39 : vector<1x128xf32> to vector<8x128xf32>
    %113 = arith.addf %111, %112 : vector<8x128xf32>
    %cst_50 = arith.constant 0.000000e+00 : f32
    %114 = vector.broadcast %cst_50 : f32 to vector<8x128xf32>
    %115 = arith.maximumf %113, %114 : vector<8x128xf32>
    %116 = arith.addf %115, %29 : vector<8x128xf32>
    %c8_i32_51 = arith.constant 8 : i32
    %117 = vector.broadcast %c8_i32_51 : i32 to vector<8x1xi32>
    %118 = arith.cmpi slt, %23, %117 : vector<8x1xi32>
    %cst_52 = arith.constant 0.000000e+00 : f32
    %119 = vector.shape_cast %118 : vector<8x1xi1> to vector<8x1xi1>
    %120 = vector.broadcast %119 : vector<8x1xi1> to vector<8x128xi1>
    %121 = vector.broadcast %cst_52 : f32 to vector<8x128xf32>
    %122 = arith.select %120, %116, %121 : vector<8x128xi1>, vector<8x128xf32>
    %123 = arith.truncf %122 : vector<8x128xf32> to vector<8x128xbf16>
    %c0_53 = arith.constant 0 : index
    %c0_54 = arith.constant 0 : index
    %c0_55 = arith.constant 0 : index
    %124 = vector.load %arg15[%c0_53, %c0_54, %c0_55] : memref<1x8x128xbf16, #tpu.memory_space<vmem>>, vector<1x8x128xbf16>
    %125 = vector.shape_cast %124 : vector<1x8x128xbf16> to vector<8x128xbf16>
    %126 = vector.shape_cast %123 : vector<8x128xbf16> to vector<1x8x128xbf16>
    tpu.vector_store %arg15[%c0_53, %c0_54, %c0_55], %126 {strides = array<i32>} : memref<1x8x128xbf16, #tpu.memory_space<vmem>>, vector<1x8x128xbf16>,
    return
  }
  func.func @transform_0(%arg0: i32) -> (i32, i32, i32) {
    %c0_i32 = arith.constant 0 : i32
    %c0_i32_0 = arith.constant 0 : i32
    %c0_i32_1 = arith.constant 0 : i32
    return %arg0, %c0_i32, %c0_i32_0 : i32, i32, i32
  }
  func.func @transform_1(%arg0: i32) -> (i32, i32) {
    %c0_i32 = arith.constant 0 : i32
    %c0_i32_0 = arith.constant 0 : i32
    %c0_i32_1 = arith.constant 0 : i32
    return %c0_i32, %c0_i32_0 : i32, i32
  }
  func.func @transform_2(%arg0: i32) -> (i32, i32) {
    %c0_i32 = arith.constant 0 : i32
    %c0_i32_0 = arith.constant 0 : i32
    %c0_i32_1 = arith.constant 0 : i32
    return %c0_i32, %c0_i32_0 : i32, i32
  }
  func.func @transform_3(%arg0: i32) -> (i32, i32) {
    %c0_i32 = arith.constant 0 : i32
    %c0_i32_0 = arith.constant 0 : i32
    %c0_i32_1 = arith.constant 0 : i32
    return %c0_i32, %c0_i32_0 : i32, i32
  }
  func.func @transform_4(%arg0: i32) -> (i32, i32) {
    %c0_i32 = arith.constant 0 : i32
    %c0_i32_0 = arith.constant 0 : i32
    %c0_i32_1 = arith.constant 0 : i32
    return %c0_i32, %c0_i32_0 : i32, i32
  }
  func.func @transform_5(%arg0: i32) -> (i32, i32) {
    %c0_i32 = arith.constant 0 : i32
    %c0_i32_0 = arith.constant 0 : i32
    %c0_i32_1 = arith.constant 0 : i32
    return %c0_i32, %c0_i32_0 : i32, i32
  }
  func.func @transform_6(%arg0: i32) -> (i32, i32) {
    %c0_i32 = arith.constant 0 : i32
    %c0_i32_0 = arith.constant 0 : i32
    %c0_i32_1 = arith.constant 0 : i32
    return %c0_i32, %c0_i32_0 : i32, i32
  }
  func.func @transform_7(%arg0: i32) -> (i32, i32) {
    %c0_i32 = arith.constant 0 : i32
    %c0_i32_0 = arith.constant 0 : i32
    %c0_i32_1 = arith.constant 0 : i32
    return %c0_i32, %c0_i32_0 : i32, i32
  }
  func.func @transform_8(%arg0: i32) -> (i32, i32) {
    %c0_i32 = arith.constant 0 : i32
    %c0_i32_0 = arith.constant 0 : i32
    %c0_i32_1 = arith.constant 0 : i32
    return %c0_i32, %c0_i32_0 : i32, i32
  }
  func.func @transform_9(%arg0: i32) -> (i32, i32) {
    %c0_i32 = arith.constant 0 : i32
    %c0_i32_0 = arith.constant 0 : i32
    %c0_i32_1 = arith.constant 0 : i32
    return %c0_i32, %c0_i32_0 : i32, i32
  }
  func.func @transform_10(%arg0: i32) -> (i32, i32) {
    %c0_i32 = arith.constant 0 : i32
    %c0_i32_0 = arith.constant 0 : i32
    %c0_i32_1 = arith.constant 0 : i32
    return %c0_i32, %c0_i32_0 : i32, i32
  }
  func.func @transform_11(%arg0: i32) -> (i32, i32) {
    %c0_i32 = arith.constant 0 : i32
    %c0_i32_0 = arith.constant 0 : i32
    %c0_i32_1 = arith.constant 0 : i32
    return %c0_i32, %c0_i32_0 : i32, i32
  }
  func.func @transform_12(%arg0: i32) -> (i32, i32) {
    %c0_i32 = arith.constant 0 : i32
    %c0_i32_0 = arith.constant 0 : i32
    %c0_i32_1 = arith.constant 0 : i32
    return %c0_i32, %c0_i32_0 : i32, i32
  }
  func.func @transform_13(%arg0: i32) -> (i32, i32) {
    %c0_i32 = arith.constant 0 : i32
    %c0_i32_0 = arith.constant 0 : i32
    %c0_i32_1 = arith.constant 0 : i32
    return %c0_i32, %c0_i32_0 : i32, i32
  }
  func.func @transform_14(%arg0: i32) -> (i32, i32, i32) {
    %c0_i32 = arith.constant 0 : i32
    %c0_i32_0 = arith.constant 0 : i32
    %c0_i32_1 = arith.constant 0 : i32
    return %arg0, %c0_i32, %c0_i32_0 : i32, i32, i32
  }
}

</mosaic_0001>

<bundles_post_ra>
// kernel: encoder_block_forward.3
= control target key start
LH: loop header
LB: loop body
LE: loop exit
PB: predicated region body
PF: predicated region fallthrough
CT: control target
= control target key end

     0   :  { %9 = vsyncpa [#allocation3], 0  ;;  %s855_s0 = inlined_call_operand.vmem [shape: bf16[2,32,32], index: 0, kind: input, shape index: {}]   ;;  %s856_s1 = inlined_call_operand.vmem [shape: bf16[16,128], index: 1, kind: input, shape index: {}]   ;;  %s857_s2 = inlined_call_operand.hbm [shape: bf16[32,128], index: 2, kind: input, shape index: {}]   ;;  %s858_s3 = inlined_call_operand.hbm [shape: f32[1,128], index: 3, kind: input, shape index: {}]   ;;  %s859_s4 = inlined_call_operand.vmem [shape: bf16[2,32,128], index: 4, kind: output, shape index: {}]  }
   0x1   :  { %10 = vsyncpa [#allocation5], 0  ;;  %s749_s15 = smov 0  }
   0x2 LB: > { %s755_s16 = sadd.s32 4294967295, %s717_s15   ;;  %p545_p0 = scmp.ge.s32.totalorder %s717_s15, 1  ;;  %s717_s15 = sphi %s749_s15, %s16_s15  }
   0x3   : > { %p136_p1 = scmp.lt.s32.totalorder %s717_s15, 3  ;;  %s719_s17 = smov [#allocation2]  }
   0x4   : > { %s151_s18 = sshll.u32 %s719_s17, 4  ;;  %p860_p3 = scmp.eq.s32.totalorder %s755_s16, 0  ;;  %s152_s18 = int_to_ptr.vmem [resolvable:$true] %s151_s18 }
   0x5   : > { %p759_p2 = pnand %p545_p0, %p136_p1  ;;  %s720_s20 = smov [#allocation4]  }
   0x6   : > { %s165_s21 = sshll.u32 %s720_s20, 4  ;;  %s647_s25 = scalar_lea.hbm %s857_s2, 256  ;;  %s772_s21 = int_to_ptr.vmem [resolvable:$true] %s165_s21 }
   0x7   : > { %s862_s19 = scalar_select %p759_p2, 1, 0 }
   0x8   : > { %p618_p4 = pneg %p759_p2  ;;  %p648_p6 = scmp.ne.s32.totalorder %s857_s2, %s647_s25 }
   0x9   : > { %p654_p10 = scmp.lt.u32.totalorder %s647_s25, %s857_s2 }
   0xa   : > { %p768_p5 = pnand %p860_p3, %p618_p4 }
   0xc   : > { %p649_p7 = pneg %p768_p5 }
   0xe   : > { %p650_p8 = pnand %p649_p7, %p648_p6 }
  0x10   : > { %p651_p9 = pneg %p650_p8 }
  0x12   : > { %p656_p11 = pnand %p654_p10, %p651_p9 }
  0x14   : > { %659 = shalt.err (!%p656_p11)
}
  0x15   : > { %s660_s30 = scalar_lea.vmem %s152_s18, 256  ;;  %p668_p1 = scmp.lt.s32.totalorder %s152_s18, %s152_s18 }
  0x16   : > { %p661_p12 = scmp.ne.s32.totalorder %s152_s18, %s660_s30  ;;  %p669_p4 = scmp.lt.s32.totalorder %s660_s30, %s660_s30 }
  0x18   : > { %p663_p13 = pnand %p661_p12, %p649_p7  ;;  %p670_p3 = por %p669_p4, %p668_p1 }
  0x1a   : > { %p664_p0 = pneg %p663_p13 }
  0x1c   : > { %p671_p2 = pnand %p670_p3, %p664_p0 }
  0x1e   : > { %674 = shalt.err (!%p671_p2)
}
  0x1f   : > { %s721_s5 = smov 64   ;;  %s722_s6 = smov 4  }
  0x20   : > { %621 = dma.hbm_to_vmem [thread:$0]  (!%p768_p5), %s857_s2, 256, %s152_s18, [#allocation3], %s721_s5, %s721_s5, %s722_s6  }
  0x21   : > { %s675_s11 = scalar_lea.hbm %s858_s3, 16 }
  0x22   : > { %p676_p6 = scmp.ne.s32.totalorder %s858_s3, %s675_s11  ;;  %p682_p8 = scmp.lt.u32.totalorder %s675_s11, %s858_s3 }
  0x24   : > { %p678_p2 = pnand %p676_p6, %p649_p7 }
  0x26   : > { %p679_p3 = pneg %p678_p2 }
  0x28   : > { %p684_p9 = pnand %p682_p8, %p679_p3 }
  0x2a   : > { %687 = shalt.err (!%p684_p9)
}
  0x2b   : > { %s688_s18 = scalar_lea.vmem %s772_s21, 16  ;;  %s695_s20 = scalar_lea.vmem %s772_s21, 32 }
  0x2c   : > { %p689_p10 = scmp.ne.s32.totalorder %s772_s21, %s688_s18  ;;  %p696_p13 = scmp.lt.s32.totalorder %s772_s21, %s772_s21 }
  0x2d   : > { %p697_p0 = scmp.lt.s32.totalorder %s695_s20, %s688_s18 }
  0x2e   : > { %p691_p11 = pnand %p689_p10, %p649_p7 }
  0x2f   : > { %p698_p1 = por %p697_p0, %p696_p13 }
  0x30   : > { %p692_p12 = pneg %p691_p11 }
  0x32   : > { %p699_p4 = pnand %p698_p1, %p692_p12 }
  0x34   : > { %702 = shalt.err (!%p699_p4)
}
  0x35   : > { %624 = dma.hbm_to_vmem [thread:$0]  (!%p768_p5), %s858_s3, 16, %s772_s21, [#allocation5]  }
  0x36   : > { %p864_p6 = scmp.ne.s32.totalorder %s862_s19, 0 }
  0x37   : > { %p865_p7 = scmp.eq.s32.totalorder (!%p864_p6), %s755_s16, 0 }
  0x38   : > { %186 = sbr.rel (%p864_p6) target bundleno = 420 (0x1a4), region = 36 }
  0x3f   : > { %708 = dma.done.wait (%p865_p7), [#allocation3], 256   ;;  %p866_p2 = pmov %p865_p7 }
  0x41   : > { %710 = vsyncadd (%p866_p2), [#allocation3], 4294967040  ;;  %p867_p3 = pmov %p866_p2 }
  0x42   : > { %p868_p8 = pmov %p866_p2 }
  0x43   : > { %712 = dma.done.wait (%p867_p3), [#allocation5], 16  }
  0x44   : > { %714 = vsyncadd (%p868_p8), [#allocation5], 4294967280  ;;  %p216_p9 = scmp.lt.s32.totalorder %s755_s16, 1  ;;  %vm356_vm0 = vcmask 261120   ;;  %s723_s26 = smov 112   ;;  %v644_v2 = vld [vmem:[#allocation2] sm:$0xff]   ;;  %v318_v11 = vlaneseq }
  0x45   : > { %v645_v3 = vld [vmem:[%s856_s1] sm:$0xff]   ;;  %602 = vmatprep.subr.bf16.mxu1 %v644_v2  ;;  %v646_v4 = vld [vmem:[#allocation2 + $0x8] sm:$0xff]   ;;  %vm258_vm1 = vcmask 130048   ;;  %v565_v22 = vld [vmem:[#allocation4] ss:$0 sm:$0xff] }
  0x46   : > { %s870_s16 = smov (!%p216_p9, %s755_s16), 1  ;;  %603 = vmatpush3.bf16.msra.mxu1 %v644_v2  ;;  %596 = vmatprep.subr.bf16.mxu0 %v645_v3  ;;  %v319_v12 = vshrl.u32 %v318_v11, 7 }
  0x47   : > { %s572_s19 = sshll.u32 %s870_s16, 4  ;;  %604 = vmatprep.subr.bf16.mxu1 %v646_v4  ;;  %597 = vmatpush3.bf16.msra.mxu0 %v645_v3 }
  0x48   : > { %s220_s25 = scalar_lea.vmem %s855_s0, %s572_s19  ;;  %vm320_vm2 = vcmp.lt.s32.totalorder %v319_v12, 1  ;;  %vm328_vm3 = vcmp.eq.s32.totalorder %v319_v12, 0  ;;  %s225_s5 = scalar_lea.vmem %s859_s4, %s572_s19 }
  0x49   : > { %v642_v0 = vld [vmem:[%s220_s25] sm:$0xff]   ;;  %v643_v1 = vld [vmem:[%s220_s25 + $0x8] sm:$0xff]  }
  0x4a   : > { %248 = vrot.lane.b32.xlu0 %v642_v0, %s723_s26  ;;  %606 = vmatprep.mubr.msk.bf16.mxu1 %vm356_vm0, %v642_v0 }
  0x4b   : > { %605 = vmatpush3.bf16.msra.mxu1 %v646_v4 }
  0x4e   : > { %250 = vrot.lane.b32.xlu0 %v643_v1, %s723_s26  ;;  %607 = vmatmul.mubr.msk.bf16.vlgmr.msra.gmra.mrb[0].mxu1 %vm356_vm0, %v643_v1 }
  0xbc   : > { %v249_v5 = vpop.permute.xlu0 %248 }
  0xbd   : > { %598 = vmatprep.mubr.msk.bf16.mxu0 %vm258_vm1, %v249_v5 }
  0xc0   : > { %v251_v6 = vpop.permute.xlu0 %250 }
  0xc1   : > { %599 = vmatmul.mubr.msk.bf16.vlgmr.msra.gmra.mrb[0].mxu0 %vm258_vm1, %v251_v6 }
 0x121   : > { %v608_v7 = vpop.f32.mrb[0].mxu1 }
 0x122   : > { %v397_v8 = vpop.f32.mrb[1].mxu1 }
 0x123   : > { %v609_v9 = vpop.f32.mrb[2].mxu1 }
 0x124   : > { %v400_v10 = vpop.f32.mrb[3].mxu1 }
 0x194   : > { %v600_v13 = vpop.f32.mrb[0].mxu0 }
 0x195   : > { %v299_v14 = vpop.f32.mrb[1].mxu0  ;;  %v316_v17 = vrot.slane %v600_v13, 7 }
 0x196   : > { %v314_v15 = vrot.slane %v299_v14, 7  ;;  %v601_v16 = vpop.f32.mrb[2].mxu0 }
 0x197   : > { %v317_v18 = vrot.slane %v601_v16, 7  ;;  %v302_v19 = vpop.f32.mrb[3].mxu0 }
 0x198   : > { %v315_v20 = vrot.slane %v302_v19, 7 }
 0x199   : > { %v324_v21 = vsel %vm320_vm2, %v317_v18, %v314_v15  ;;  %v321_v23 = vsel %vm320_vm2, %v316_v17, %v317_v18 }
 0x19a   : > { %v340_v24 = vsel %vm328_vm3, 0.0, %v324_v21  ;;  %v415_v25 = vadd.f32 %v609_v9, %v321_v23  ;;  %v322_v26 = vsel %vm320_vm2, %v315_v20, %v316_v17  ;;  %v323_v27 = vsel %vm320_vm2, %v314_v15, %v315_v20 }
 0x19b   : > { %v412_v28 = vadd.f32 %v397_v8, %v340_v24  ;;  %v414_v29 = vadd.f32 %v608_v7, %v322_v26  ;;  %v413_v30 = vadd.f32 %v400_v10, %v323_v27 }
 0x19c   : > { %v425_v31 = vadd.f32 %v565_v22, %v415_v25 }
 0x19d   : > { %v424_v32 = vadd.f32 %v565_v22, %v414_v29  ;;  %v422_v33 = vadd.f32 %v565_v22, %v412_v28  ;;  %v423_v34 = vadd.f32 %v565_v22, %v413_v30 }
 0x19e   : > { %v429_v35 = vmax.f32 %v425_v31, 0.0 }
 0x19f   : > { %v428_v36 = vmax.f32 %v424_v32, 0.0  ;;  %v426_v37 = vmax.f32 %v422_v33, 0.0  ;;  %v427_v38 = vmax.f32 %v423_v34, 0.0 }
 0x1a1   : > { %v586_v39 = vpack.c.bf16 %v429_v35, %v428_v36  ;;  %v581_v40 = vpack.c.bf16 %v427_v38, %v426_v37 }
 0x1a3   : > { %588 = vst [vmem:[%s225_s5 + $0x8] sm:$0xff] %v586_v39   ;;  %582 = vst [vmem:[%s225_s5] sm:$0xff] %v581_v40  }
 0x1a4 PF: > { %s16_s15 = sadd.s32 1, %s717_s15  }
 0x1a5   : > { %p13_p5 = scmp.ge.s32.totalorder %s16_s15, 4  }
 0x1a7   :  { %15 = sbr.rel (!%p13_p5) target bundleno = 2 (0x2), region = 75 }
 0x1ae   :  { %487 = vsyncpa [#allocation3], 1 }
 0x1af   :  { %489 = vsyncpa [#allocation3 + $0x1], 1 }
 0x1b0   :  { %490 = vsyncpa [#allocation5], 1 }

// kernel: encoder_block_forward.4
= control target key start
LH: loop header
LB: loop body
LE: loop exit
PB: predicated region body
PF: predicated region fallthrough
CT: control target
= control target key end

     0   :  { %19 = vsyncpa [#allocation3], 0  ;;  %s1911_s29 = smov 0   ;;  %s2218_s0 = inlined_call_operand.vmem [shape: bf16[2,16,256], index: 0, kind: input, shape index: {}]   ;;  %s2219_s1 = inlined_call_operand.vmem [shape: bf16[128,128], index: 1, kind: input, shape index: {}]   ;;  %s2220_s2 = inlined_call_operand.vmem [shape: bf16[256,128], index: 2, kind: input, shape index: {}]   ;;  %s2221_s3 = inlined_call_operand.vmem [shape: f32[1,128], index: 3, kind: input, shape index: {}]   ;;  %s2222_s4 = inlined_call_operand.vmem [shape: bf16[128,128], index: 4, kind: input, shape index: {}]   ;;  %s2223_s5 = inlined_call_operand.vmem [shape: bf16[128,128], index: 5, kind: input, shape index: {}]   ;;  %s2224_s6 = inlined_call_operand.vmem [shape: bf16[128,128], index: 6, kind: input, shape index: {}]   ;;  %s2225_s7 = inlined_call_operand.vmem [shape: f32[1,128], index: 7, kind: input, shape index: {}]   ;;  %s2226_s8 = inlined_call_operand.vmem [shape: f32[1,128], index: 8, kind: input, shape index: {}]   ;;  %s2227_s9 = inlined_call_operand.vmem [shape: f32[1,128], index: 9, kind: input, shape index: {}]   ;;  %s2228_s10 = inlined_call_operand.hbm [shape: bf16[128,128], index: 10, kind: input, shape index: {}]   ;;  %s2229_s11 = inlined_call_operand.vmem [shape: f32[1,128], index: 11, kind: input, shape index: {}]   ;;  %s2230_s12 = inlined_call_operand.vmem [shape: f32[1,128], index: 12, kind: input, shape index: {}]   ;;  %s2231_s13 = inlined_call_operand.vmem [shape: f32[1,128], index: 13, kind: input, shape index: {}]   ;;  %s2232_s14 = inlined_call_operand.vmem [shape: bf16[2,16,128], index: 14, kind: output, shape index: {}]  }
   0x1 LB: > { %s1917_s30 = sadd.s32 4294967295, %s1828_s29   ;;  %p1436_p0 = scmp.ge.s32.totalorder %s1828_s29, 1  ;;  %s1828_s29 = sphi %s1911_s29, %s25_s29  }
   0x2   : > { %p355_p1 = scmp.lt.s32.totalorder %s1828_s29, 3  ;;  %s1830_s15 = smov [#allocation2]  }
   0x3   : > { %s394_s16 = sshll.u32 %s1830_s15, 4  ;;  %p2233_p3 = scmp.eq.s32.totalorder %s1917_s30, 0  ;;  %s395_s16 = int_to_ptr.vmem [resolvable:$true] %s394_s16 }
   0x4   : > { %p1921_p2 = pnand %p1436_p0, %p355_p1  ;;  %s1790_s21 = scalar_lea.hbm %s2228_s10, 1024 }
   0x5   : > { %p1791_p6 = scmp.ne.s32.totalorder %s2228_s10, %s1790_s21  ;;  %p1797_p10 = scmp.lt.u32.totalorder %s1790_s21, %s2228_s10 }
   0x6   : > { %s2235_s17 = scalar_select %p1921_p2, 1, 0 }
   0x7   : > { %p1703_p4 = pneg %p1921_p2 }
   0x9   : > { %p1930_p5 = pnand %p2233_p3, %p1703_p4 }
   0xb   : > { %p1792_p7 = pneg %p1930_p5 }
   0xd   : > { %p1793_p8 = pnand %p1792_p7, %p1791_p6 }
   0xf   : > { %p1794_p9 = pneg %p1793_p8 }
  0x11   : > { %p1799_p11 = pnand %p1797_p10, %p1794_p9 }
  0x13   : > { %1802 = shalt.err (!%p1799_p11)
}
  0x14   : > { %s1803_s26 = scalar_lea.vmem %s395_s16, 1024  ;;  %p1811_p1 = scmp.lt.s32.totalorder %s395_s16, %s395_s16 }
  0x15   : > { %p1804_p12 = scmp.ne.s32.totalorder %s395_s16, %s1803_s26  ;;  %p1812_p4 = scmp.lt.s32.totalorder %s1803_s26, %s1803_s26 }
  0x17   : > { %p1806_p13 = pnand %p1804_p12, %p1792_p7  ;;  %p1813_p3 = por %p1812_p4, %p1811_p1 }
  0x19   : > { %p1807_p0 = pneg %p1806_p13 }
  0x1b   : > { %p1814_p2 = pnand %p1813_p3, %p1807_p0 }
  0x1d   : > { %1817 = shalt.err (!%p1814_p2)
}
  0x1e   : > { %s1831_s27 = smov 64   ;;  %s1832_s28 = smov 4  }
  0x1f   : > { %1706 = dma.hbm_to_vmem [thread:$0]  (!%p1930_p5), %s2228_s10, 1024, %s395_s16, [#allocation3], %s1831_s27, %s1831_s27, %s1832_s28  }
  0x20   : > { %p2237_p6 = scmp.ne.s32.totalorder %s2235_s17, 0 }
  0x21   : > { %p2238_p8 = scmp.eq.s32.totalorder (!%p2237_p6), %s1917_s30, 0 }
  0x22   : > { %427 = sbr.rel (%p2237_p6) target bundleno = 1403 (0x57b), region = 76 }
  0x29   : > { %1823 = dma.done.wait (%p2238_p8), [#allocation3], 1024   ;;  %p2239_p7 = pmov %p2238_p8 }
  0x2a   : > { %v1833_v0 = vmov 0.0   ;;  %vm1834_vm0 = vmmov 0   ;;  %v1723_v1 = vld [vmem:[%s2219_s1] sm:$0xff]   ;;  %v1726_v4 = vld [vmem:[%s2219_s1 + $0x8] sm:$0xff]   ;;  %v1729_v7 = vld [vmem:[%s2219_s1 + $0x10] sm:$0xff]   ;;  %p473_p2 = scmp.lt.s32.totalorder %s1917_s30, 1  ;;  %v632_v43 = vlaneseq }
  0x2b   : > { %1825 = vsyncadd (%p2239_p7), [#allocation3], 4294966272  ;;  %1599 = vmatprep.subr.bf16.mxu0 %v1833_v0  ;;  %1615 = vmatprep.mubr.msk.bf16.mxu0 %vm1834_vm0, %v1833_v0  ;;  %v1724_v2 = vld [vmem:[%s2220_s2 + $0x40] sm:$0xff]   ;;  %v1727_v5 = vld [vmem:[%s2220_s2 + $0x48] sm:$0xff]   ;;  %vm1835_vm4 = vmmov 1  }
  0x2c   : > { %1600 = vmatpush3.bf16.msra.mxu0 %v1723_v1  ;;  %v1725_v3 = vld [vmem:[%s2220_s2] sm:$0xff]   ;;  %1541 = vmatprep.subr.bf16.mxu1 %v1724_v2  ;;  %v1728_v6 = vld [vmem:[%s2220_s2 + $0x8] sm:$0xff]   ;;  %v1730_v8 = vld [vmem:[%s2220_s2 + $0x50] sm:$0xff]   ;;  %s2241_s30 = smov (!%p473_p2, %s1917_s30), 1  ;;  %v2116_v44 = vshrl.u32 %v632_v43, 7 }
  0x2d   : > { %1601 = vmatprep.subr.bf16.mxu0 %v1833_v0  ;;  %1542 = vmatpush3.bf16.msra.mxu1 %v1725_v3  ;;  %v1731_v9 = vld [vmem:[%s2220_s2 + $0x10] sm:$0xff]   ;;  %v1732_v10 = vld [vmem:[%s2219_s1 + $0x18] sm:$0xff]   ;;  %v1736_v13 = vld [vmem:[%s2220_s2 + $0x60] sm:$0xff]   ;;  %s1522_s23 = sshll.u32 %s2241_s30, 4  ;;  %s1523_s17 = sshll.u32 %s2241_s30, 3 }
  0x2e   : > { %1543 = vmatprep.subr.bf16.mxu1 %v1727_v5  ;;  %v1733_v11 = vld [vmem:[%s2220_s2 + $0x58] sm:$0xff]   ;;  %v1735_v14 = vld [vmem:[%s2219_s1 + $0x20] sm:$0xff]   ;;  %v1739_v16 = vld [vmem:[%s2220_s2 + $0x68] sm:$0xff]   ;;  %s477_s19 = scalar_lea.vmem %s2218_s0, %s1522_s23  ;;  %vm634_vm1 = vcmp.lt.s32.totalorder %v2116_v44, 1  ;;  %vm638_vm2 = vcmp.eq.s32.totalorder %v2116_v44, 0  ;;  %vm885_vm6 = vcmp.lt.s32.totalorder %v2116_v44, 7  ;;  %s482_s22 = scalar_lea.vmem %s2232_s14, %s1523_s17 }
  0x2f   : > { %v1734_v12 = vld [vmem:[%s2220_s2 + $0x18] sm:$0xff]   ;;  %v1737_v15 = vld [vmem:[%s2220_s2 + $0x20] sm:$0xff]   ;;  %v1738_v17 = vld [vmem:[%s2219_s1 + $0x28] sm:$0xff]  }
  0x30   : > { %1602 = vmatpush3.bf16.msra.mxu0 %v1726_v4  ;;  %v1740_v18 = vld [vmem:[%s2220_s2 + $0x28] sm:$0xff]   ;;  %v1742_v19 = vld [vmem:[%s2220_s2 + $0x70] sm:$0xff]   ;;  %v1745_v23 = vld [vmem:[%s2220_s2 + $0x78] sm:$0xff]  }
  0x31   : > { %1603 = vmatprep.subr.bf16.mxu0 %v1833_v0  ;;  %1544 = vmatpush3.bf16.msra.mxu1 %v1728_v6  ;;  %v1741_v20 = vld [vmem:[%s2219_s1 + $0x30] sm:$0xff]   ;;  %v1747_v22 = vld [vmem:[%s477_s19 + $0x4] ss:$8 sps:$4 sm:$0xff]   ;;  %v1744_v24 = vld [vmem:[%s2219_s1 + $0x38] sm:$0xff]  }
  0x32   : > { %1545 = vmatprep.subr.bf16.mxu1 %v1730_v8  ;;  %v1743_v21 = vld [vmem:[%s2220_s2 + $0x30] sm:$0xff]   ;;  %778 = vmatprep.mubr.bf16.mxu1 %v1747_v22  ;;  %v1746_v25 = vld [vmem:[%s2220_s2 + $0x38] sm:$0xff]   ;;  %v1750_v26 = vld [vmem:[%s2223_s5] sm:$0xff]  }
  0x33   : > { %v1749_v27 = vld [vmem:[%s477_s19] ss:$8 sps:$4 sm:$0xff]   ;;  %v1753_v31 = vld [vmem:[%s2223_s5 + $0x10] sm:$0xff]   ;;  %v1755_v33 = vld [vmem:[%s2223_s5 + $0x18] sm:$0xff]  }
  0x34   : > { %1604 = vmatpush3.bf16.msra.mxu0 %v1729_v7  ;;  %v1752_v28 = vld [vmem:[%s2222_s4] sm:$0xff]   ;;  %v1751_v29 = vld [vmem:[%s2223_s5 + $0x8] sm:$0xff]   ;;  %v1756_v32 = vld [vmem:[%s2222_s4 + $0x10] sm:$0xff]  }
  0x35   : > { %1605 = vmatprep.subr.bf16.mxu0 %v1833_v0  ;;  %1546 = vmatpush3.bf16.msra.mxu1 %v1731_v9  ;;  %v1754_v30 = vld [vmem:[%s2222_s4 + $0x8] sm:$0xff]   ;;  %v1758_v34 = vld [vmem:[%s2222_s4 + $0x18] sm:$0xff]   ;;  %v1757_v35 = vld [vmem:[%s2223_s5 + $0x20] sm:$0xff]  }
  0x36   : > { %1547 = vmatprep.subr.bf16.mxu1 %v1733_v11  ;;  %v1759_v36 = vld [vmem:[%s2223_s5 + $0x28] sm:$0xff]   ;;  %v1760_v37 = vld [vmem:[%s2222_s4 + $0x20] sm:$0xff]   ;;  %v1761_v38 = vld [vmem:[%s2223_s5 + $0x30] sm:$0xff]  }
  0x37   : > { %v1762_v39 = vld [vmem:[%s2222_s4 + $0x28] sm:$0xff]   ;;  %v1763_v40 = vld [vmem:[%s2223_s5 + $0x38] sm:$0xff]   ;;  %v1764_v41 = vld [vmem:[%s2222_s4 + $0x30] sm:$0xff]  }
  0x38   : > { %1606 = vmatpush3.bf16.msra.mxu0 %v1732_v10  ;;  %v1765_v42 = vld [vmem:[%s2222_s4 + $0x38] sm:$0xff]   ;;  %v1471_v58 = vld [vmem:[%s2221_s3] ss:$0 sm:$0xff]  ;;  %vm1488_vm3 = vmneg %vm638_vm2 }
  0x39   : > { %1607 = vmatprep.subr.bf16.mxu0 %v1833_v0  ;;  %1548 = vmatpush3.bf16.msra.mxu1 %v1734_v12  ;;  %v1766_v5 = vld [vmem:[%s2224_s6] sm:$0xff]   ;;  %vm1489_vm5 = vmpackc.low %vm1835_vm4, %vm1488_vm3  ;;  %v1767_v11 = vld [vmem:[%s2224_s6 + $0x8] sm:$0xff]  }
  0x3a   : > { %1549 = vmatprep.subr.bf16.mxu1 %v1736_v13  ;;  %v1768_v12 = vld [vmem:[%s2224_s6 + $0x10] sm:$0xff]   ;;  %v1769_v13 = vld [vmem:[%s2224_s6 + $0x18] sm:$0xff]   ;;  %v1774_v43 = vld [vmem:[#allocation2] sm:$0xff]  }
  0x3c   : > { %1608 = vmatpush3.bf16.msra.mxu0 %v1735_v14  ;;  %v1770_v14 = vld [vmem:[%s2224_s6 + $0x20] sm:$0xff]  }
  0x3d   : > { %1609 = vmatprep.subr.bf16.mxu0 %v1833_v0  ;;  %1550 = vmatpush3.bf16.msra.mxu1 %v1737_v15  ;;  %v1771_v15 = vld [vmem:[%s2224_s6 + $0x28] sm:$0xff]  }
  0x3e   : > { %1551 = vmatprep.subr.bf16.mxu1 %v1739_v16  ;;  %v1772_v16 = vld [vmem:[%s2224_s6 + $0x30] sm:$0xff]  }
  0x40   : > { %1610 = vmatpush3.bf16.msra.mxu0 %v1738_v17  ;;  %v637_v17 = vadd.s32 8, %v2116_v44 }
  0x41   : > { %1611 = vmatprep.subr.bf16.mxu0 %v1833_v0  ;;  %1552 = vmatpush3.bf16.msra.mxu1 %v1740_v18 }
  0x42   : > { %1553 = vmatprep.subr.bf16.mxu1 %v1742_v19  ;;  %vm1531_vm7 = vcmp.ne.s32.totalorder %v637_v17, 15 }
  0x43   : > { %vm1501_vm8 = vmpackc.low %vm1531_vm7, %vm1835_vm4 }
  0x44   : > { %1612 = vmatpush3.bf16.msra.mxu0 %v1741_v20  ;;  %v1773_v20 = vld [vmem:[%s2224_s6 + $0x38] sm:$0xff]  }
  0x45   : > { %1613 = vmatprep.subr.bf16.mxu0 %v1833_v0  ;;  %1554 = vmatpush3.bf16.msra.mxu1 %v1743_v21 }
  0x46   : > { %1555 = vmatprep.subr.bf16.mxu1 %v1745_v23 }
  0x48   : > { %1614 = vmatpush3.bf16.msra.mxu0 %v1744_v24 }
  0x49   : > { %1619 = vmatprep.subr.bf16.mxu0 %v1833_v0  ;;  %1556 = vmatpush3.bf16.msra.mxu1 %v1746_v25 }
  0x4a   : > { %1639 = vmatprep.subr.bf16.mxu1 %v1833_v0 }
  0x4b   : > { %1616 = vmatmul.mubr.bf16.vlgmr.msra.gmra.mrb[0].mxu0 %v1747_v22 }
  0x4c   : > { %1620 = vmatpush3.bf16.msra.mxu0 %v1750_v26  ;;  %1635 = vmatprep.mubr.msk.bf16.mxu0 %vm1834_vm0, %v1833_v0 }
  0x4d   : > { %779 = vmatmul.mubr.bf16.vlgmr.msra.gmra.mrb[0].mxu1 %v1749_v27  ;;  %1621 = vmatprep.subr.bf16.mxu0 %v1833_v0 }
  0x4e   : > { %1640 = vmatpush3.bf16.msra.mxu1 %v1752_v28  ;;  %1655 = vmatprep.mubr.msk.bf16.mxu1 %vm1834_vm0, %v1833_v0 }
  0x4f   : > { %1641 = vmatprep.subr.bf16.mxu1 %v1833_v0 }
  0x50   : > { %1622 = vmatpush3.bf16.msra.mxu0 %v1751_v29 }
  0x51   : > { %1623 = vmatprep.subr.bf16.mxu0 %v1833_v0 }
  0x52   : > { %1642 = vmatpush3.bf16.msra.mxu1 %v1754_v30 }
  0x53   : > { %1643 = vmatprep.subr.bf16.mxu1 %v1833_v0 }
  0x54   : > { %1624 = vmatpush3.bf16.msra.mxu0 %v1753_v31 }
  0x55   : > { %1625 = vmatprep.subr.bf16.mxu0 %v1833_v0 }
  0x56   : > { %1644 = vmatpush3.bf16.msra.mxu1 %v1756_v32 }
  0x57   : > { %1645 = vmatprep.subr.bf16.mxu1 %v1833_v0 }
  0x58   : > { %1626 = vmatpush3.bf16.msra.mxu0 %v1755_v33 }
  0x59   : > { %1627 = vmatprep.subr.bf16.mxu0 %v1833_v0 }
  0x5a   : > { %1646 = vmatpush3.bf16.msra.mxu1 %v1758_v34 }
  0x5b   : > { %1647 = vmatprep.subr.bf16.mxu1 %v1833_v0 }
  0x5c   : > { %1628 = vmatpush3.bf16.msra.mxu0 %v1757_v35  ;;  %v1504_v35 = vld [vmem:[%s2225_s7] ss:$0 sm:$0xff] }
  0x5d   : > { %1629 = vmatprep.subr.bf16.mxu0 %v1833_v0 }
  0x5e   : > { %1648 = vmatpush3.bf16.msra.mxu1 %v1760_v37 }
  0x5f   : > { %1649 = vmatprep.subr.bf16.mxu1 %v1833_v0 }
  0x60   : > { %1630 = vmatpush3.bf16.msra.mxu0 %v1759_v36 }
  0x61   : > { %1631 = vmatprep.subr.bf16.mxu0 %v1833_v0 }
  0x62   : > { %1650 = vmatpush3.bf16.msra.mxu1 %v1762_v39 }
  0x63   : > { %1651 = vmatprep.subr.bf16.mxu1 %v1833_v0 }
  0x64   : > { %1632 = vmatpush3.bf16.msra.mxu0 %v1761_v38 }
  0x65   : > { %1633 = vmatprep.subr.bf16.mxu0 %v1833_v0 }
  0x66   : > { %1652 = vmatpush3.bf16.msra.mxu1 %v1764_v41 }
  0x67   : > { %1653 = vmatprep.subr.bf16.mxu1 %v1833_v0 }
  0x68   : > { %1634 = vmatpush3.bf16.msra.mxu0 %v1763_v40 }
  0x69   : > { %1659 = vmatprep.subr.bf16.mxu0 %v1833_v0 }
  0x6a   : > { %1654 = vmatpush3.bf16.msra.mxu1 %v1765_v42 }
  0x6b   : > { %1679 = vmatprep.subr.bf16.mxu1 %v1833_v0 }
 0x11e   : > { %v623_v45 = vpop.f32.mrb[0].mxu0 }
 0x11f   : > { %v1617_v46 = vpop.f32.mrb[1].mxu0  ;;  %v630_v49 = vrot.slane %v623_v45, 7 }
 0x120   : > { %v1557_v47 = vpop.f32.mrb[0].mxu1  ;;  %v626_v48 = vpop.f32.mrb[2].mxu0 }
 0x121   : > { %v631_v50 = vrot.slane %v626_v48, 7  ;;  %v1558_v51 = vpop.f32.mrb[1].mxu1  ;;  %v1618_v52 = vpop.f32.mrb[3].mxu0 }
 0x122   : > { %v1559_v53 = vadd.f32 %v1558_v51, %v1557_v47  ;;  %v1560_v54 = vpop.f32.mrb[2].mxu1  ;;  %v1775_v52 = vld [vmem:[#allocation2 + $0x8] sm:$0xff]  }
 0x123   : > { %v636_v55 = vsel %vm634_vm1, %v631_v50, %v630_v49  ;;  %v635_v56 = vsel %vm634_vm1, %v630_v49, %v631_v50  ;;  %v1561_v57 = vpop.f32.mrb[3].mxu1 }
 0x124   : > { %v644_v59 = vsel %vm638_vm2, 0.0, %v636_v55  ;;  %v1562_v60 = vadd.f32 %v1561_v57, %v1560_v54  ;;  %v1777_v54 = vld [vmem:[#allocation2 + $0x18] sm:$0xff]   ;;  %v1778_v55 = vld [vmem:[#allocation2 + $0x20] sm:$0xff]   ;;  %v1780_v57 = vld [vmem:[#allocation2 + $0x30] sm:$0xff]  }
 0x125   : > { %v787_v61 = vadd.f32 %v1559_v53, %v644_v59  ;;  %v1776_v53 = vld [vmem:[#allocation2 + $0x10] sm:$0xff]  }
 0x126   : > { %v788_v62 = vadd.f32 %v1562_v60, %v635_v56  ;;  %v1779_v56 = vld [vmem:[#allocation2 + $0x28] sm:$0xff]  }
 0x127   : > { %v795_v63 = vadd.f32 %v1471_v58, %v787_v61 }
 0x128   : > { %v796_v1 = vadd.f32 %v1471_v58, %v788_v62  ;;  %v1781_v58 = vld [vmem:[#allocation2 + $0x38] sm:$0xff]  }
 0x129   : > { %v2129_v2 = vmax.f32 %v795_v63, 0.0 }
 0x12a   : > { %v2131_v3 = vmax.f32 %v796_v1, 0.0 }
 0x12b   : > { %v877_v4 = vrot.slane %v2129_v2, 7  ;;  %v883_v18 = vrot.slane %v2129_v2, 1 }
 0x12c   : > { %v878_v6 = vrot.slane %v2131_v3, 7  ;;  %v897_v7 = vpack.c.bf16 %v2131_v3, %v2129_v2  ;;  %v884_v19 = vrot.slane %v2131_v3, 1 }
 0x12e   : > { %1636 = vmatmul.mubr.bf16.vlgmr.msra.gmra.mrb[4].mxu0 %v897_v7  ;;  %v879_v8 = vsel %vm634_vm1, %v877_v4, %v878_v6  ;;  %v880_v9 = vsel %vm634_vm1, %v878_v6, %v877_v4  ;;  %v886_v21 = vsel %vm885_vm6, %v883_v18, %v884_v19  ;;  %v887_v22 = vsel %vm885_vm6, %v884_v19, %v883_v18 }
 0x12f   : > { %1660 = vmatpush3.bf16.msra.mxu0 %v1766_v5  ;;  %v1490_v10 = vpack.c.bf16 %v879_v8, %v880_v9  ;;  %1675 = vmatprep.mubr.msk.bf16.mxu0 %vm1834_vm0, %v1833_v0  ;;  %v1502_v23 = vpack.c.bf16 %v887_v22, %v886_v21  ;;  %v1505_v5 = vld [vmem:[%s2226_s8] ss:$0 sm:$0xff] }
 0x130   : > { %1661 = vmatprep.subr.bf16.mxu0 %v1833_v0 }
 0x131   : > { %1656 = vmatmul.mubr.msk.bf16.vlgmr.msra.gmra.mrb[4].mxu1 %vm1489_vm5, %v1490_v10 }
 0x132   : > { %1695 = vmatprep.mubr.msk.bf16.mxu1 %vm1834_vm0, %v1833_v0  ;;  %1680 = vmatpush3.bf16.msra.mxu1 %v1774_v43 }
 0x133   : > { %1662 = vmatpush3.bf16.msra.mxu0 %v1767_v11  ;;  %1681 = vmatprep.subr.bf16.mxu1 %v1833_v0 }
 0x134   : > { %1663 = vmatprep.subr.bf16.mxu0 %v1833_v0 }
 0x136   : > { %1682 = vmatpush3.bf16.msra.mxu1 %v1775_v52 }
 0x137   : > { %1664 = vmatpush3.bf16.msra.mxu0 %v1768_v12  ;;  %1683 = vmatprep.subr.bf16.mxu1 %v1833_v0 }
 0x138   : > { %1665 = vmatprep.subr.bf16.mxu0 %v1833_v0 }
 0x13a   : > { %1684 = vmatpush3.bf16.msra.mxu1 %v1776_v53 }
 0x13b   : > { %1666 = vmatpush3.bf16.msra.mxu0 %v1769_v13  ;;  %1685 = vmatprep.subr.bf16.mxu1 %v1833_v0 }
 0x13c   : > { %1667 = vmatprep.subr.bf16.mxu0 %v1833_v0 }
 0x13e   : > { %1686 = vmatpush3.bf16.msra.mxu1 %v1777_v54 }
 0x13f   : > { %1668 = vmatpush3.bf16.msra.mxu0 %v1770_v14  ;;  %1687 = vmatprep.subr.bf16.mxu1 %v1833_v0 }
 0x140   : > { %1669 = vmatprep.subr.bf16.mxu0 %v1833_v0 }
 0x142   : > { %1688 = vmatpush3.bf16.msra.mxu1 %v1778_v55 }
 0x143   : > { %1670 = vmatpush3.bf16.msra.mxu0 %v1771_v15  ;;  %1689 = vmatprep.subr.bf16.mxu1 %v1833_v0 }
 0x144   : > { %1671 = vmatprep.subr.bf16.mxu0 %v1833_v0 }
 0x146   : > { %1690 = vmatpush3.bf16.msra.mxu1 %v1779_v56 }
 0x147   : > { %1672 = vmatpush3.bf16.msra.mxu0 %v1772_v16  ;;  %1691 = vmatprep.subr.bf16.mxu1 %v1833_v0  ;;  %v1507_v16 = vld [vmem:[%s2229_s11] ss:$0 sm:$0xff] }
 0x148   : > { %1673 = vmatprep.subr.bf16.mxu0 %v1833_v0 }
 0x14a   : > { %1692 = vmatpush3.bf16.msra.mxu1 %v1780_v57 }
 0x14b   : > { %1674 = vmatpush3.bf16.msra.mxu0 %v1773_v20  ;;  %1693 = vmatprep.subr.bf16.mxu1 %v1833_v0  ;;  %v1506_v0 = vld [vmem:[%s2227_s9] ss:$0 sm:$0xff] }
 0x14e   : > { %1676 = vmatmul.mubr.msk.bf16.vlgmr.msra.gmra.mrb[8].mxu0 %vm1501_vm8, %v1502_v23  ;;  %1694 = vmatpush3.bf16.msra.mxu1 %v1781_v58 }
 0x201   : > { %v980_v24 = vpop.f32.mrb[4].mxu0 }
 0x202   : > { %v1637_v25 = vpop.f32.mrb[5].mxu0 }
 0x203   : > { %v983_v26 = vpop.f32.mrb[6].mxu0 }
 0x204   : > { %v1638_v27 = vpop.f32.mrb[7].mxu0  ;;  %v1069_v28 = vpop.f32.mrb[4].mxu1 }
 0x205   : > { %v1070_v29 = vadd.f32 %v1069_v28, %v980_v24  ;;  %v1657_v30 = vpop.f32.mrb[5].mxu1 }
 0x206   : > { %v1072_v31 = vpop.f32.mrb[6].mxu1 }
 0x207   : > { %v1073_v32 = vadd.f32 %v1072_v31, %v983_v26  ;;  %v1658_v33 = vpop.f32.mrb[7].mxu1 }
 0x221   : > { %v1159_v34 = vpop.f32.mrb[8].mxu0 }
 0x222   : > { %v1166_v36 = vadd.f32 %v1159_v34, %v1070_v29  ;;  %v1677_v37 = vpop.f32.mrb[9].mxu0 }
 0x223   : > { %v1162_v38 = vpop.f32.mrb[10].mxu0 }
 0x224   : > { %v1167_v39 = vadd.f32 %v1162_v38, %v1073_v32  ;;  %v1678_v40 = vpop.f32.mrb[11].mxu0  ;;  %v1174_v41 = vadd.f32 %v1504_v35, %v1166_v36  ;;  %v1516_v38 = vld [vmem:[%s2230_s12] ss:$0 sm:$0xff] }
 0x226   : > { %1176 = vadd.xlane.f32.xlu0 %v1174_v41  ;;  %v1175_v42 = vadd.f32 %v1504_v35, %v1167_v39 }
 0x22a   : > { %1178 = vadd.xlane.f32.xlu0 %v1175_v42 }
 0x2b3   : > { %v1177_v44 = vpop.xlane.xlu0 %1176 }
 0x2b4   : > { %v1181_v45 = vmul.f32 0.0078125, %v1177_v44 }
 0x2b6   : > { %v1183_v46 = vsub.f32 %v1174_v41, %v1181_v45  ;;  %v1517_v41 = vld [vmem:[%s2231_s13] ss:$0 sm:$0xff] }
 0x2b7   : > { %v1179_v47 = vpop.xlane.xlu0 %1178 }
 0x2b8   : > { %v1182_v48 = vmul.f32 0.0078125, %v1179_v47  ;;  %v1185_v49 = vmul.f32 %v1183_v46, %v1183_v46 }
 0x2ba   : > { %v1184_v50 = vsub.f32 %v1175_v42, %v1182_v48  ;;  %1187 = vadd.xlane.f32.xlu1 %v1185_v49 }
 0x2bc   : > { %v1186_v51 = vmul.f32 %v1184_v50, %v1184_v50 }
 0x2be   : > { %1189 = vadd.xlane.f32.xlu1 %v1186_v51 }
 0x347   : > { %v1188_v59 = vpop.xlane.xlu1 %1187 }
 0x348   : > { %v1191_v60 = vmul.f32 0.0078125, %v1188_v59 }
 0x34a   : > { %v1193_v61 = vadd.f32 1e-05, %v1191_v60 }
 0x34b   : > { %v1190_v62 = vpop.xlane.xlu1 %1189 }
 0x34c   : > { %1782 = vrsqrt.f32 %v1193_v61  ;;  %v1192_v63 = vmul.f32 0.0078125, %v1190_v62 }
 0x34e   : > { %v1194_v1 = vadd.f32 1e-05, %v1192_v63 }
 0x350   : > { %1784 = vrsqrt.f32 %v1194_v1 }
 0x356   : > { %v1783_v4 = vpop.eup %1782 }
 0x357   : > { %v1197_v6 = vmul.f32 %v1783_v4, %v1183_v46 }
 0x359   : > { %v1205_v7 = vmul.f32 %v1505_v5, %v1197_v6 }
 0x35a   : > { %v1785_v8 = vpop.eup %1784 }
 0x35b   : > { %v1198_v9 = vmul.f32 %v1785_v8, %v1184_v50  ;;  %v1213_v11 = vadd.f32 %v1506_v0, %v1205_v7 }
 0x35d   : > { %v1206_v10 = vmul.f32 %v1505_v5, %v1198_v9  ;;  %v1215_v13 = vmax.f32 %v1213_v11, 0.0 }
 0x35f   : > { %v1214_v12 = vadd.f32 %v1506_v0, %v1206_v10 }
 0x361   : > { %v1216_v14 = vmax.f32 %v1214_v12, 0.0 }
 0x363   : > { %v1217_v15 = vpack.c.bf16 %v1216_v14, %v1215_v13 }
 0x365   : > { %1696 = vmatmul.mubr.bf16.vlgmr.msra.gmra.mrb[8].mxu1 %v1217_v15 }
 0x438   : > { %v1306_v17 = vpop.f32.mrb[8].mxu1 }
 0x439   : > { %v1307_v18 = vadd.f32 %v1507_v16, %v1306_v17  ;;  %v1697_v19 = vpop.f32.mrb[9].mxu1 }
 0x43a   : > { %v1309_v20 = vpop.f32.mrb[10].mxu1 }
 0x43b   : > { %v1310_v21 = vadd.f32 %v1507_v16, %v1309_v20  ;;  %1313 = vadd.xlane.f32.xlu0 %v1307_v18  ;;  %v1698_v22 = vpop.f32.mrb[11].mxu1 }
 0x43d   : > { %1315 = vadd.xlane.f32.xlu1 %v1310_v21 }
 0x4c8   : > { %v1314_v23 = vpop.xlane.xlu0 %1313 }
 0x4c9   : > { %v1317_v24 = vmul.f32 0.0078125, %v1314_v23 }
 0x4ca   : > { %v1316_v25 = vpop.xlane.xlu1 %1315 }
 0x4cb   : > { %v1319_v26 = vsub.f32 %v1307_v18, %v1317_v24  ;;  %v1318_v27 = vmul.f32 0.0078125, %v1316_v25 }
 0x4cd   : > { %v1320_v28 = vsub.f32 %v1310_v21, %v1318_v27  ;;  %v1321_v29 = vmul.f32 %v1319_v26, %v1319_v26 }
 0x4cf   : > { %1323 = vadd.xlane.f32.xlu0 %v1321_v29  ;;  %v1322_v30 = vmul.f32 %v1320_v28, %v1320_v28 }
 0x4d1   : > { %1325 = vadd.xlane.f32.xlu1 %v1322_v30 }
 0x55c   : > { %v1324_v31 = vpop.xlane.xlu0 %1323 }
 0x55d   : > { %v1327_v32 = vmul.f32 0.0078125, %v1324_v31 }
 0x55e   : > { %v1326_v33 = vpop.xlane.xlu1 %1325 }
 0x55f   : > { %v1329_v34 = vadd.f32 1e-05, %v1327_v32  ;;  %v1328_v35 = vmul.f32 0.0078125, %v1326_v33 }
 0x561   : > { %1786 = vrsqrt.f32 %v1329_v34  ;;  %v1330_v36 = vadd.f32 1e-05, %v1328_v35 }
 0x563   : > { %1788 = vrsqrt.f32 %v1330_v36 }
 0x56b   : > { %v1787_v37 = vpop.eup %1786 }
 0x56c   : > { %v1333_v39 = vmul.f32 %v1787_v37, %v1319_v26 }
 0x56d   : > { %v1789_v40 = vpop.eup %1788 }
 0x56e   : > { %v1341_v42 = vmul.f32 %v1516_v38, %v1333_v39  ;;  %v1334_v43 = vmul.f32 %v1789_v40, %v1320_v28 }
 0x570   : > { %v1349_v44 = vadd.f32 %v1517_v41, %v1341_v42  ;;  %v1342_v45 = vmul.f32 %v1516_v38, %v1334_v43 }
 0x572   : > { %v1351_v46 = vmax.f32 %v1349_v44, 0.0  ;;  %v1350_v47 = vadd.f32 %v1517_v41, %v1342_v45 }
 0x574   : > { %v1352_v48 = vmax.f32 %v1350_v47, 0.0  ;;  %v1353_v49 = vadd.f32 %v1351_v46, %v2129_v2 }
 0x576   : > { %v1354_v50 = vadd.f32 %v1352_v48, %v2131_v3 }
 0x578   : > { %v1529_v51 = vpack.c.bf16 %v1354_v50, %v1353_v49 }
 0x57a   : > { %1530 = vst [vmem:[%s482_s22] sm:$0xff] %v1529_v51  }
 0x57b PF: > { %s25_s29 = sadd.s32 1, %s1828_s29  }
 0x57c   : > { %p22_p3 = scmp.ge.s32.totalorder %s25_s29, 4  }
 0x57e   :  { %24 = sbr.rel (!%p22_p3) target bundleno = 1 (0x1), region = 111 }
 0x585   :  { %1388 = vsyncpa [#allocation3], 1 }
 0x586   :  { %1390 = vsyncpa [#allocation3 + $0x1], 1 }

// kernel: encoder_block_forward.5
= control target key start
LH: loop header
LB: loop body
LE: loop exit
PB: predicated region body
PF: predicated region fallthrough
CT: control target
= control target key end

     0   :  { %s1736_s29 = smov 0   ;;  %s2007_s0 = inlined_call_operand.vmem [shape: bf16[2,8,256], index: 0, kind: input, shape index: {}]   ;;  %s2008_s1 = inlined_call_operand.vmem [shape: bf16[128,128], index: 1, kind: input, shape index: {}]   ;;  %s2009_s2 = inlined_call_operand.vmem [shape: bf16[256,128], index: 2, kind: input, shape index: {}]   ;;  %s2010_s3 = inlined_call_operand.vmem [shape: f32[1,128], index: 3, kind: input, shape index: {}]   ;;  %s2011_s4 = inlined_call_operand.vmem [shape: bf16[128,128], index: 4, kind: input, shape index: {}]   ;;  %s2012_s5 = inlined_call_operand.vmem [shape: bf16[128,128], index: 5, kind: input, shape index: {}]   ;;  %s2013_s6 = inlined_call_operand.vmem [shape: bf16[128,128], index: 6, kind: input, shape index: {}]   ;;  %s2014_s7 = inlined_call_operand.vmem [shape: f32[1,128], index: 7, kind: input, shape index: {}]   ;;  %s2015_s8 = inlined_call_operand.vmem [shape: f32[1,128], index: 8, kind: input, shape index: {}]   ;;  %s2016_s9 = inlined_call_operand.vmem [shape: f32[1,128], index: 9, kind: input, shape index: {}]   ;;  %s2017_s10 = inlined_call_operand.vmem [shape: bf16[128,128], index: 10, kind: input, shape index: {}]   ;;  %s2018_s11 = inlined_call_operand.vmem [shape: f32[1,128], index: 11, kind: input, shape index: {}]   ;;  %s2019_s12 = inlined_call_operand.vmem [shape: f32[1,128], index: 12, kind: input, shape index: {}]   ;;  %s2020_s13 = inlined_call_operand.vmem [shape: f32[1,128], index: 13, kind: input, shape index: {}]   ;;  %s2021_s14 = inlined_call_operand.vmem [shape: bf16[2,8,128], index: 14, kind: output, shape index: {}]  }
   0x1 LB: > { %s1325_s30 = sadd.s32 4294967295, %s1657_s29   ;;  %p1329_p0 = scmp.ge.s32.totalorder %s1657_s29, 1  ;;  %s1657_s29 = sphi %s1736_s29, %s24_s29  }
   0x2   : > { %p412_p1 = scmp.lt.s32.totalorder %s1657_s29, 3 }
   0x4   : > { %p413_p2 = pnand %p1329_p0, %p412_p1 }
   0x5   : > { %v1589_v0 = vld [vmem:[%s2008_s1] sm:$0xff] (!%p413_p2)   ;;  %v1659_v1 = vmov (!%p413_p2), 0.0   ;;  %vm1660_vm0 = vmmov (!%p413_p2), 0   ;;  %v1592_v4 = vld [vmem:[%s2008_s1 + $0x8] sm:$0xff] (!%p413_p2)   ;;  %v1595_v7 = vld [vmem:[%s2008_s1 + $0x10] sm:$0xff] (!%p413_p2)   ;;  %p457_p3 = scmp.lt.s32.totalorder (!%p413_p2), %s1325_s30, 1  ;;  %v610_v44 = vlaneseq (!%p413_p2) }
   0x6   : > { %416 = sbr.rel (%p413_p2) target bundleno = 1358 (0x54e), region = 76  ;;  %1479 = vmatprep.subr.bf16.mxu0 (!%p413_p2), %v1659_v1  ;;  %v1590_v2 = vld [vmem:[%s2009_s2 + $0x40] sm:$0xff] (!%p413_p2)   ;;  %1495 = vmatprep.mubr.msk.bf16.mxu0 (!%p413_p2), %vm1660_vm0, %v1659_v1  ;;  %v1593_v5 = vld [vmem:[%s2009_s2 + $0x48] sm:$0xff] (!%p413_p2)   ;;  %v1596_v8 = vld [vmem:[%s2009_s2 + $0x50] sm:$0xff] (!%p413_p2)  }
   0x7   : > { %1480 = vmatpush3.bf16.msra.mxu0 (!%p413_p2), %v1589_v0  ;;  %v1591_v3 = vld [vmem:[%s2009_s2] sm:$0xff] (!%p413_p2)   ;;  %1421 = vmatprep.subr.bf16.mxu1 (!%p413_p2), %v1590_v2  ;;  %v1594_v6 = vld [vmem:[%s2009_s2 + $0x8] sm:$0xff] (!%p413_p2)   ;;  %v1597_v9 = vld [vmem:[%s2009_s2 + $0x10] sm:$0xff] (!%p413_p2)   ;;  %v611_v45 = vshrl.u32 (!%p413_p2), %v610_v44, 7 }
   0x8   : > { %1481 = vmatprep.subr.bf16.mxu0 (!%p413_p2), %v1659_v1  ;;  %1422 = vmatpush3.bf16.msra.mxu1 (!%p413_p2), %v1591_v3  ;;  %v1598_v10 = vld [vmem:[%s2008_s1 + $0x18] sm:$0xff] (!%p413_p2)   ;;  %v1602_v13 = vld [vmem:[%s2009_s2 + $0x60] sm:$0xff] (!%p413_p2)   ;;  %v1605_v16 = vld [vmem:[%s2009_s2 + $0x68] sm:$0xff] (!%p413_p2)  }
   0x9   : > { %1423 = vmatprep.subr.bf16.mxu1 (!%p413_p2), %v1593_v5  ;;  %v1599_v11 = vld [vmem:[%s2009_s2 + $0x58] sm:$0xff] (!%p413_p2)   ;;  %v1601_v14 = vld [vmem:[%s2008_s1 + $0x20] sm:$0xff] (!%p413_p2)   ;;  %v1604_v17 = vld [vmem:[%s2008_s1 + $0x28] sm:$0xff] (!%p413_p2)   ;;  %vm612_vm1 = vcmp.eq.s32.totalorder (!%p413_p2), %v611_v45, 0  ;;  %vm1411_vm4 = vcmp.ne.s32.totalorder (!%p413_p2), %v611_v45, 7 }
   0xa   : > { %v1600_v12 = vld [vmem:[%s2009_s2 + $0x18] sm:$0xff] (!%p413_p2)   ;;  %v1603_v15 = vld [vmem:[%s2009_s2 + $0x20] sm:$0xff] (!%p413_p2)   ;;  %v1606_v18 = vld [vmem:[%s2009_s2 + $0x28] sm:$0xff] (!%p413_p2)  }
   0xb   : > { %1482 = vmatpush3.bf16.msra.mxu0 (!%p413_p2), %v1592_v4  ;;  %v1608_v19 = vld [vmem:[%s2009_s2 + $0x70] sm:$0xff] (!%p413_p2)   ;;  %v1611_v23 = vld [vmem:[%s2009_s2 + $0x78] sm:$0xff] (!%p413_p2)   ;;  %v1615_v27 = vld [vmem:[%s2012_s5] sm:$0xff] (!%p413_p2)  }
   0xc   : > { %1483 = vmatprep.subr.bf16.mxu0 (!%p413_p2), %v1659_v1  ;;  %1424 = vmatpush3.bf16.msra.mxu1 (!%p413_p2), %v1594_v6  ;;  %v1607_v20 = vld [vmem:[%s2008_s1 + $0x30] sm:$0xff] (!%p413_p2)   ;;  %v1610_v25 = vld [vmem:[%s2008_s1 + $0x38] sm:$0xff] (!%p413_p2)   ;;  %v1616_v29 = vld [vmem:[%s2011_s4] sm:$0xff] (!%p413_p2)  }
   0xd   : > { %1425 = vmatprep.subr.bf16.mxu1 %v1596_v8  ;;  %s2023_s30 = smov (!%p457_p3, %s1325_s30), 1  ;;  %v1609_v21 = vld [vmem:[%s2009_s2 + $0x30] sm:$0xff]   ;;  %v1612_v26 = vld [vmem:[%s2009_s2 + $0x38] sm:$0xff]   ;;  %v1617_v30 = vld [vmem:[%s2012_s5 + $0x8] sm:$0xff]  }
   0xe   : > { %s1410_s21 = sshll.u32 %s2023_s30, 3  ;;  %v1618_v31 = vld [vmem:[%s2011_s4 + $0x8] sm:$0xff]   ;;  %v1619_v32 = vld [vmem:[%s2012_s5 + $0x10] sm:$0xff]   ;;  %v1621_v34 = vld [vmem:[%s2012_s5 + $0x18] sm:$0xff]   ;;  %s1332_s19 = sshll.u32 %s2023_s30, 2 }
   0xf   : > { %1484 = vmatpush3.bf16.msra.mxu0 %v1595_v7  ;;  %s461_s28 = scalar_lea.vmem %s2007_s0, %s1410_s21  ;;  %v1620_v33 = vld [vmem:[%s2011_s4 + $0x10] sm:$0xff]   ;;  %v1622_v35 = vld [vmem:[%s2011_s4 + $0x18] sm:$0xff]   ;;  %v1623_v36 = vld [vmem:[%s2012_s5 + $0x20] sm:$0xff]   ;;  %s465_s22 = scalar_lea.vmem %s2021_s14, %s1332_s19 }
  0x10   : > { %1485 = vmatprep.subr.bf16.mxu0 %v1659_v1  ;;  %1426 = vmatpush3.bf16.msra.mxu1 %v1597_v9  ;;  %v467_v22 = vld [vmem:[%s461_s28] sm:$0xff]  ;;  %v1625_v38 = vld [vmem:[%s2012_s5 + $0x28] sm:$0xff]   ;;  %v1627_v40 = vld [vmem:[%s2012_s5 + $0x30] sm:$0xff]  }
  0x11   : > { %1427 = vmatprep.subr.bf16.mxu1 %v1599_v11  ;;  %v1333_v24 = vcombine.high %v467_v22, %v467_v22  ;;  %v1342_v28 = vcombine.low %v467_v22, %v467_v22  ;;  %v1624_v37 = vld [vmem:[%s2011_s4 + $0x20] sm:$0xff]   ;;  %v1626_v39 = vld [vmem:[%s2011_s4 + $0x28] sm:$0xff]   ;;  %v1628_v41 = vld [vmem:[%s2011_s4 + $0x30] sm:$0xff]  }
  0x12   : > { %v1629_v42 = vld [vmem:[%s2012_s5 + $0x38] sm:$0xff]   ;;  %v1359_v56 = vld [vmem:[%s2010_s3] ss:$0 sm:$0xff]  ;;  %vm1376_vm2 = vmneg %vm612_vm1 }
  0x13   : > { %1486 = vmatpush3.bf16.msra.mxu0 %v1598_v10  ;;  %747 = vmatprep.mubr.bf16.mxu1 %v1333_v24  ;;  %v1630_v43 = vld [vmem:[%s2011_s4 + $0x38] sm:$0xff]   ;;  %v1631_v61 = vld [vmem:[%s2013_s6] sm:$0xff]   ;;  %vm1378_vm3 = vmpackc.low %vm1376_vm2, %vm1376_vm2 }
  0x14   : > { %1487 = vmatprep.subr.bf16.mxu0 %v1659_v1  ;;  %1428 = vmatpush3.bf16.msra.mxu1 %v1600_v12  ;;  %v1632_v2 = vld [vmem:[%s2013_s6 + $0x8] sm:$0xff]   ;;  %v1633_v3 = vld [vmem:[%s2013_s6 + $0x10] sm:$0xff]   ;;  %v1634_v4 = vld [vmem:[%s2013_s6 + $0x18] sm:$0xff]  }
  0x15   : > { %1429 = vmatprep.subr.bf16.mxu1 %v1602_v13  ;;  %v1635_v5 = vld [vmem:[%s2013_s6 + $0x20] sm:$0xff]   ;;  %v1636_v6 = vld [vmem:[%s2013_s6 + $0x28] sm:$0xff]   ;;  %v1637_v7 = vld [vmem:[%s2013_s6 + $0x30] sm:$0xff]  }
  0x16   : > { %v1638_v8 = vld [vmem:[%s2013_s6 + $0x38] sm:$0xff]   ;;  %vm1391_vm5 = vmpackc.low %vm1411_vm4, %vm1411_vm4  ;;  %v1396_v45 = vld [vmem:[%s2016_s9] ss:$0 sm:$0xff] }
  0x17   : > { %1488 = vmatpush3.bf16.msra.mxu0 %v1601_v14 }
  0x18   : > { %1489 = vmatprep.subr.bf16.mxu0 %v1659_v1  ;;  %1430 = vmatpush3.bf16.msra.mxu1 %v1603_v15 }
  0x19   : > { %1431 = vmatprep.subr.bf16.mxu1 %v1605_v16 }
  0x1b   : > { %1490 = vmatpush3.bf16.msra.mxu0 %v1604_v17 }
  0x1c   : > { %1491 = vmatprep.subr.bf16.mxu0 %v1659_v1  ;;  %1432 = vmatpush3.bf16.msra.mxu1 %v1606_v18 }
  0x1d   : > { %1433 = vmatprep.subr.bf16.mxu1 %v1608_v19 }
  0x1f   : > { %1492 = vmatpush3.bf16.msra.mxu0 %v1607_v20 }
  0x20   : > { %1493 = vmatprep.subr.bf16.mxu0 %v1659_v1  ;;  %1434 = vmatpush3.bf16.msra.mxu1 %v1609_v21  ;;  %v1394_v21 = vld [vmem:[%s2014_s7] ss:$0 sm:$0xff] }
  0x21   : > { %1435 = vmatprep.subr.bf16.mxu1 %v1611_v23 }
  0x23   : > { %1494 = vmatpush3.bf16.msra.mxu0 %v1610_v25 }
  0x24   : > { %1499 = vmatprep.subr.bf16.mxu0 %v1659_v1  ;;  %1436 = vmatpush3.bf16.msra.mxu1 %v1612_v26 }
  0x25   : > { %1519 = vmatprep.subr.bf16.mxu1 %v1659_v1 }
  0x26   : > { %1496 = vmatmul.mubr.bf16.vlgmr.msra.gmra.mrb[0].mxu0 %v1333_v24 }
  0x27   : > { %1500 = vmatpush3.bf16.msra.mxu0 %v1615_v27  ;;  %1515 = vmatprep.mubr.msk.bf16.mxu0 %vm1660_vm0, %v1659_v1  ;;  %v1639_v27 = vld [vmem:[%s2017_s10] sm:$0xff]  }
  0x28   : > { %748 = vmatmul.mubr.bf16.vlgmr.msra.gmra.mrb[0].mxu1 %v1342_v28  ;;  %1501 = vmatprep.subr.bf16.mxu0 %v1659_v1  ;;  %v1640_v28 = vld [vmem:[%s2017_s10 + $0x8] sm:$0xff]  }
  0x29   : > { %1520 = vmatpush3.bf16.msra.mxu1 %v1616_v29  ;;  %1535 = vmatprep.mubr.msk.bf16.mxu1 %vm1660_vm0, %v1659_v1 }
  0x2a   : > { %1521 = vmatprep.subr.bf16.mxu1 %v1659_v1 }
  0x2b   : > { %1502 = vmatpush3.bf16.msra.mxu0 %v1617_v30 }
  0x2c   : > { %1503 = vmatprep.subr.bf16.mxu0 %v1659_v1 }
  0x2d   : > { %1522 = vmatpush3.bf16.msra.mxu1 %v1618_v31 }
  0x2e   : > { %1523 = vmatprep.subr.bf16.mxu1 %v1659_v1 }
  0x2f   : > { %1504 = vmatpush3.bf16.msra.mxu0 %v1619_v32 }
  0x30   : > { %1505 = vmatprep.subr.bf16.mxu0 %v1659_v1 }
  0x31   : > { %1524 = vmatpush3.bf16.msra.mxu1 %v1620_v33  ;;  %v1641_v33 = vld [vmem:[%s2017_s10 + $0x10] sm:$0xff]  }
  0x32   : > { %1525 = vmatprep.subr.bf16.mxu1 %v1659_v1 }
  0x33   : > { %1506 = vmatpush3.bf16.msra.mxu0 %v1621_v34  ;;  %v1642_v34 = vld [vmem:[%s2017_s10 + $0x18] sm:$0xff]  }
  0x34   : > { %1507 = vmatprep.subr.bf16.mxu0 %v1659_v1 }
  0x35   : > { %1526 = vmatpush3.bf16.msra.mxu1 %v1622_v35  ;;  %v1643_v35 = vld [vmem:[%s2017_s10 + $0x20] sm:$0xff]  }
  0x36   : > { %1527 = vmatprep.subr.bf16.mxu1 %v1659_v1 }
  0x37   : > { %1508 = vmatpush3.bf16.msra.mxu0 %v1623_v36  ;;  %v1644_v36 = vld [vmem:[%s2017_s10 + $0x28] sm:$0xff]  }
  0x38   : > { %1509 = vmatprep.subr.bf16.mxu0 %v1659_v1 }
  0x39   : > { %1528 = vmatpush3.bf16.msra.mxu1 %v1624_v37  ;;  %v1645_v37 = vld [vmem:[%s2017_s10 + $0x30] sm:$0xff]  }
  0x3a   : > { %1529 = vmatprep.subr.bf16.mxu1 %v1659_v1 }
  0x3b   : > { %1510 = vmatpush3.bf16.msra.mxu0 %v1625_v38  ;;  %v1646_v38 = vld [vmem:[%s2017_s10 + $0x38] sm:$0xff]  }
  0x3c   : > { %1511 = vmatprep.subr.bf16.mxu0 %v1659_v1 }
  0x3d   : > { %1530 = vmatpush3.bf16.msra.mxu1 %v1626_v39 }
  0x3e   : > { %1531 = vmatprep.subr.bf16.mxu1 %v1659_v1 }
  0x3f   : > { %1512 = vmatpush3.bf16.msra.mxu0 %v1627_v40 }
  0x40   : > { %1513 = vmatprep.subr.bf16.mxu0 %v1659_v1 }
  0x41   : > { %1532 = vmatpush3.bf16.msra.mxu1 %v1628_v41 }
  0x42   : > { %1533 = vmatprep.subr.bf16.mxu1 %v1659_v1 }
  0x43   : > { %1514 = vmatpush3.bf16.msra.mxu0 %v1629_v42 }
  0x44   : > { %1539 = vmatprep.subr.bf16.mxu0 %v1659_v1 }
  0x45   : > { %1534 = vmatpush3.bf16.msra.mxu1 %v1630_v43  ;;  %v1395_v43 = vld [vmem:[%s2015_s8] ss:$0 sm:$0xff] }
  0x46   : > { %1559 = vmatprep.subr.bf16.mxu1 %v1659_v1 }
  0xf9   : > { %v603_v46 = vpop.f32.mrb[0].mxu0 }
  0xfa   : > { %v609_v47 = vrot.slane %v603_v46, 7  ;;  %v1497_v48 = vpop.f32.mrb[1].mxu0 }
  0xfb   : > { %v1437_v49 = vpop.f32.mrb[0].mxu1  ;;  %v606_v50 = vpop.f32.mrb[2].mxu0 }
  0xfc   : > { %v615_v51 = vsel %vm612_vm1, 0.0, %v609_v47  ;;  %v1438_v52 = vpop.f32.mrb[1].mxu1  ;;  %v1498_v53 = vpop.f32.mrb[3].mxu0 }
  0xfd   : > { %v1439_v54 = vadd.f32 %v1438_v52, %v1437_v49  ;;  %v1440_v55 = vpop.f32.mrb[2].mxu1 }
  0xfe   : > { %v1441_v57 = vpop.f32.mrb[3].mxu1 }
  0xff   : > { %v755_v58 = vadd.f32 %v1439_v54, %v615_v51 }
 0x101   : > { %v762_v59 = vadd.f32 %v1359_v56, %v755_v58 }
 0x103   : > { %v1909_v60 = vmax.f32 %v762_v59, 0.0 }
 0x105   : > { %v846_v62 = vpack.c.bf16 %v1909_v60, %v1909_v60  ;;  %v838_v63 = vrot.slane %v1909_v60, 7  ;;  %v840_v9 = vrot.slane %v1909_v60, 1 }
 0x107   : > { %1516 = vmatmul.mubr.bf16.vlgmr.msra.gmra.mrb[4].mxu0 %v846_v62  ;;  %v1379_v0 = vpack.c.bf16 %v838_v63, %v838_v63  ;;  %v1392_v10 = vpack.c.bf16 %v840_v9, %v840_v9 }
 0x108   : > { %1540 = vmatpush3.bf16.msra.mxu0 %v1631_v61  ;;  %1555 = vmatprep.mubr.msk.bf16.mxu0 %vm1660_vm0, %v1659_v1 }
 0x109   : > { %1536 = vmatmul.mubr.msk.bf16.vlgmr.msra.gmra.mrb[4].mxu1 %vm1378_vm3, %v1379_v0  ;;  %1541 = vmatprep.subr.bf16.mxu0 %v1659_v1  ;;  %v1406_v0 = vld [vmem:[%s2019_s12] ss:$0 sm:$0xff] }
 0x10a   : > { %1575 = vmatprep.mubr.msk.bf16.mxu1 %vm1660_vm0, %v1659_v1  ;;  %1560 = vmatpush3.bf16.msra.mxu1 %v1639_v27 }
 0x10b   : > { %1561 = vmatprep.subr.bf16.mxu1 %v1659_v1 }
 0x10c   : > { %1542 = vmatpush3.bf16.msra.mxu0 %v1632_v2 }
 0x10d   : > { %1543 = vmatprep.subr.bf16.mxu0 %v1659_v1 }
 0x10e   : > { %1562 = vmatpush3.bf16.msra.mxu1 %v1640_v28 }
 0x10f   : > { %1563 = vmatprep.subr.bf16.mxu1 %v1659_v1 }
 0x110   : > { %1544 = vmatpush3.bf16.msra.mxu0 %v1633_v3  ;;  %v1407_v3 = vld [vmem:[%s2020_s13] ss:$0 sm:$0xff] }
 0x111   : > { %1545 = vmatprep.subr.bf16.mxu0 %v1659_v1 }
 0x112   : > { %1564 = vmatpush3.bf16.msra.mxu1 %v1641_v33 }
 0x113   : > { %1565 = vmatprep.subr.bf16.mxu1 %v1659_v1 }
 0x114   : > { %1546 = vmatpush3.bf16.msra.mxu0 %v1634_v4 }
 0x115   : > { %1547 = vmatprep.subr.bf16.mxu0 %v1659_v1 }
 0x116   : > { %1566 = vmatpush3.bf16.msra.mxu1 %v1642_v34 }
 0x117   : > { %1567 = vmatprep.subr.bf16.mxu1 %v1659_v1 }
 0x118   : > { %1548 = vmatpush3.bf16.msra.mxu0 %v1635_v5 }
 0x119   : > { %1549 = vmatprep.subr.bf16.mxu0 %v1659_v1 }
 0x11a   : > { %1568 = vmatpush3.bf16.msra.mxu1 %v1643_v35 }
 0x11b   : > { %1569 = vmatprep.subr.bf16.mxu1 %v1659_v1 }
 0x11c   : > { %1550 = vmatpush3.bf16.msra.mxu0 %v1636_v6 }
 0x11d   : > { %1551 = vmatprep.subr.bf16.mxu0 %v1659_v1 }
 0x11e   : > { %1570 = vmatpush3.bf16.msra.mxu1 %v1644_v36 }
 0x11f   : > { %1571 = vmatprep.subr.bf16.mxu1 %v1659_v1 }
 0x120   : > { %1552 = vmatpush3.bf16.msra.mxu0 %v1637_v7 }
 0x121   : > { %1553 = vmatprep.subr.bf16.mxu0 %v1659_v1 }
 0x122   : > { %1572 = vmatpush3.bf16.msra.mxu1 %v1645_v37 }
 0x123   : > { %1573 = vmatprep.subr.bf16.mxu1 %v1659_v1  ;;  %v1397_v1 = vld [vmem:[%s2018_s11] ss:$0 sm:$0xff] }
 0x124   : > { %1554 = vmatpush3.bf16.msra.mxu0 %v1638_v8 }
 0x126   : > { %1574 = vmatpush3.bf16.msra.mxu1 %v1646_v38 }
 0x127   : > { %1556 = vmatmul.mubr.msk.bf16.vlgmr.msra.gmra.mrb[8].mxu0 %vm1391_vm5, %v1392_v10 }
 0x1da   : > { %v929_v11 = vpop.f32.mrb[4].mxu0 }
 0x1db   : > { %v1517_v12 = vpop.f32.mrb[5].mxu0 }
 0x1dc   : > { %v932_v13 = vpop.f32.mrb[6].mxu0  ;;  %v1017_v14 = vpop.f32.mrb[4].mxu1 }
 0x1dd   : > { %v1018_v15 = vadd.f32 %v1017_v14, %v929_v11  ;;  %v1518_v16 = vpop.f32.mrb[7].mxu0  ;;  %v1537_v17 = vpop.f32.mrb[5].mxu1 }
 0x1de   : > { %v1020_v18 = vpop.f32.mrb[6].mxu1 }
 0x1df   : > { %v1538_v19 = vpop.f32.mrb[7].mxu1 }
 0x1fa   : > { %v1106_v20 = vpop.f32.mrb[8].mxu0 }
 0x1fb   : > { %v1112_v22 = vadd.f32 %v1106_v20, %v1018_v15  ;;  %v1557_v23 = vpop.f32.mrb[9].mxu0 }
 0x1fc   : > { %v1109_v24 = vpop.f32.mrb[10].mxu0 }
 0x1fd   : > { %v1558_v25 = vpop.f32.mrb[11].mxu0  ;;  %v1119_v26 = vadd.f32 %v1394_v21, %v1112_v22 }
 0x1ff   : > { %1120 = vadd.xlane.f32.xlu0 %v1119_v26 }
 0x28c   : > { %v1121_v29 = vpop.xlane.xlu0 %1120 }
 0x28d   : > { %v1123_v30 = vmul.f32 0.0078125, %v1121_v29 }
 0x28f   : > { %v1124_v31 = vsub.f32 %v1119_v26, %v1123_v30 }
 0x291   : > { %v1125_v32 = vmul.f32 %v1124_v31, %v1124_v31 }
 0x293   : > { %1126 = vadd.xlane.f32.xlu0 %v1125_v32 }
 0x320   : > { %v1127_v39 = vpop.xlane.xlu0 %1126 }
 0x321   : > { %v1128_v40 = vmul.f32 0.0078125, %v1127_v39 }
 0x323   : > { %v1129_v41 = vadd.f32 1e-05, %v1128_v40 }
 0x325   : > { %1647 = vrsqrt.f32 %v1129_v41 }
 0x32f   : > { %v1648_v42 = vpop.eup %1647 }
 0x330   : > { %v1131_v44 = vmul.f32 %v1648_v42, %v1124_v31 }
 0x332   : > { %v1138_v46 = vmul.f32 %v1395_v43, %v1131_v44 }
 0x334   : > { %v1145_v47 = vadd.f32 %v1396_v45, %v1138_v46 }
 0x336   : > { %v1146_v48 = vmax.f32 %v1145_v47, 0.0 }
 0x338   : > { %v1147_v49 = vpack.c.bf16 %v1146_v48, %v1146_v48 }
 0x33a   : > { %1576 = vmatmul.mubr.bf16.vlgmr.msra.gmra.mrb[8].mxu1 %v1147_v49 }
 0x40d   : > { %v1236_v50 = vpop.f32.mrb[8].mxu1 }
 0x40e   : > { %v1237_v51 = vadd.f32 %v1397_v1, %v1236_v50  ;;  %v1577_v52 = vpop.f32.mrb[9].mxu1 }
 0x40f   : > { %v1239_v53 = vpop.f32.mrb[10].mxu1 }
 0x410   : > { %1242 = vadd.xlane.f32.xlu1 %v1237_v51  ;;  %v1578_v54 = vpop.f32.mrb[11].mxu1 }
 0x49d   : > { %v1243_v55 = vpop.xlane.xlu1 %1242 }
 0x49e   : > { %v1244_v56 = vmul.f32 0.0078125, %v1243_v55 }
 0x4a0   : > { %v1245_v57 = vsub.f32 %v1237_v51, %v1244_v56 }
 0x4a2   : > { %v1246_v58 = vmul.f32 %v1245_v57, %v1245_v57 }
 0x4a4   : > { %1247 = vadd.xlane.f32.xlu1 %v1246_v58 }
 0x531   : > { %v1248_v59 = vpop.xlane.xlu1 %1247 }
 0x532   : > { %v1249_v61 = vmul.f32 0.0078125, %v1248_v59 }
 0x534   : > { %v1250_v62 = vadd.f32 1e-05, %v1249_v61 }
 0x536   : > { %1649 = vrsqrt.f32 %v1250_v62 }
 0x540   : > { %v1650_v63 = vpop.eup %1649 }
 0x541   : > { %v1252_v2 = vmul.f32 %v1650_v63, %v1245_v57 }
 0x543   : > { %v1259_v4 = vmul.f32 %v1406_v0, %v1252_v2 }
 0x545   : > { %v1266_v5 = vadd.f32 %v1407_v3, %v1259_v4 }
 0x547   : > { %v1267_v6 = vmax.f32 %v1266_v5, 0.0 }
 0x549   : > { %v1268_v7 = vadd.f32 %v1267_v6, %v1909_v60 }
 0x54b   : > { %v1270_v8 = vpack.c.bf16 %v1268_v7, %v1268_v7 }
 0x54d   : > { %1271 = vst [vmem:[%s465_s22] sm:$0xf] %v1270_v8 }
 0x54e PF: > { %s24_s29 = sadd.s32 1, %s1657_s29  }
 0x54f   : > { %p21_p4 = scmp.ge.s32.totalorder %s24_s29, 4  }
 0x551   :  { %23 = sbr.rel (!%p21_p4) target bundleno = 1 (0x1), region = 106 }

</bundles_post_ra>
